<compile_context>
chip_gen: v7x
topology: tpu7x:2x2x1
jax: 0.10.0
libtpu: 0.0.40
codegen_flags: <defaults>
</compile_context>

<pallas_src>
import jax
import jax.numpy as jnp
from jax import lax
from jax.experimental import pallas as pl
from jax.experimental.pallas import tpu as pltpu

# ----------------------------- config (small) -------------------------------
HIDDEN = 32
NUM_HEADS = 4
HEAD_DIM = HIDDEN // NUM_HEADS          # 8
NUM_LAYERS = 2
VOCAB = 64
INTERMEDIATE = int(HIDDEN * 3.5)        # 112
INTER_PAD = 128                         # lane-dense zero-pad of the MLP hidden
SEQ = 8
EPS = 1e-5
HEAD_SIZE_DIVISOR = 8.0

assert SEQ & (SEQ - 1) == 0 and HEAD_DIM & (HEAD_DIM - 1) == 0  # shift/and math

VMEM = pltpu.MemorySpace.VMEM


# ------------------------------ fused kernel ---------------------------------
def _ln(v, g, b):
    mean = jnp.mean(v, axis=-1, keepdims=True)
    var = jnp.mean((v - mean) ** 2, axis=-1, keepdims=True)
    return (v - mean) * lax.rsqrt(var + EPS) * g + b


def _rwkv5_fwd_kernel(ids_ref, posmask_ref, emb_ref,
                      pre_g_ref, pre_b_ref, lnout_g_ref, lnout_b_ref,
                      ln1_g_ref, ln1_b_ref, ln2_g_ref, ln2_b_ref,
                      a_wx_ref, a_ws_ref, a_wo_ref, ew_ref, u_ref,
                      gn_g_ref, gn_b_ref,
                      m_wx_ref, m_ws_ref, m_b_ref, m_wv_ref, m_bv_ref,
                      o_ref):
    T = ids_ref.shape[0]
    V, H = emb_ref.shape
    NH, D = NUM_HEADS, HEAD_DIM
    t_sh = T.bit_length() - 1            # log2(T)
    d_sh = D.bit_length() - 1            # log2(HEAD_DIM)
    f32, bf16 = jnp.float32, jnp.bfloat16

    posmask = posmask_ref[...]                                     # (T, 1)

    # ---- compile-time constant masks / pooling matrices (built once) -------
    # head-block mask over sublane-tiled operands: [p, i] = (p//T == i//D)
    r_bs = lax.broadcasted_iota(jnp.int32, (NH * T, H), 0)
    c_bs = lax.broadcasted_iota(jnp.int32, (NH * T, H), 1)
    blk_sub = (jnp.right_shift(r_bs, t_sh) ==
               jnp.right_shift(c_bs, d_sh)).astype(f32)            # (NH*T, H)
    # channel -> per-head lane-block expansion: [i, h*T+s] = (i//D == h)
    r_hs = lax.broadcasted_iota(jnp.int32, (H, NH * T), 0)
    c_hs = lax.broadcasted_iota(jnp.int32, (H, NH * T), 1)
    hs_big = (jnp.right_shift(r_hs, d_sh) ==
              jnp.right_shift(c_hs, t_sh)).astype(f32)             # (H, NH*T)
    # causal / diagonal masks, tiled per head along lanes (s = col % T)
    r_tt = lax.broadcasted_iota(jnp.int32, (T, NH * T), 0)
    c_tt = jnp.bitwise_and(lax.broadcasted_iota(jnp.int32, (T, NH * T), 1),
                           T - 1)
    tri_big = (r_tt > c_tt).astype(f32)                            # (T, NH*T)
    eye_big = (r_tt == c_tt).astype(f32)
    # per-head mean pooling matrix for GroupNorm(ln_x)
    r_p = lax.broadcasted_iota(jnp.int32, (H, H), 0)
    c_p = lax.broadcasted_iota(jnp.int32, (H, H), 1)
    pool = (jnp.right_shift(r_p, d_sh) ==
            jnp.right_shift(c_p, d_sh)).astype(f32) * (1.0 / D)    # (H, H)
    tvec = lax.broadcasted_iota(jnp.int32, (T, 1), 0).astype(f32)  # (T, 1)

    # ---- embedding lookup fused as a one-hot matmul (VOCAB is tiny) --------
    onehot = (ids_ref[...] ==
              lax.broadcasted_iota(jnp.int32, (T, V), 1)).astype(f32)
    x = jnp.dot(onehot, emb_ref[...], preferred_element_type=f32)  # (T, H)

    x = _ln(x, pre_g_ref[...], pre_b_ref[...])

    def token_shift(h):
        # st[t] = h[t-1] (wrap), zeroed where position_id == 0.
        # TODO(synk): continuation chunks must read the cached previous-token
        # state instead of the in-chunk wrap (kv_cache carry not implemented).
        return pltpu.roll(h, shift=1, axis=0) * posmask

    for l in range(NUM_LAYERS):          # static unroll; fine for 2 layers.
        # TODO(synk): use lax.fori_loop with dynamic ref[l] indexing for real
        # layer counts (bounds vreg live ranges, keeps compile time sane).
        # --------------------------- attention -------------------------------
        res = x
        h = _ln(x, ln1_g_ref[l], ln1_b_ref[l])
        st = token_shift(h)
        # fused k|v|r|g projection (token-mix folded into the weights), bf16 MXU
        proj = (jnp.dot(h.astype(bf16), a_wx_ref[l], preferred_element_type=f32)
                + jnp.dot(st.astype(bf16), a_ws_ref[l],
                          preferred_element_type=f32))             # (T, 4H)
        # 32-lane section slices (recurrence operands are 32-wide anyway)
        k = proj[:, 0:H]
        v = proj[:, H:2 * H]
        r = proj[:, 2 * H:3 * H]
        g = proj[:, 3 * H:4 * H]
        g = g * jax.nn.sigmoid(g)                                  # SiLU gate

        # ---- chunked RWKV5 recurrence, all heads in 3 MXU pushes ------------
        # w = exp(-exp(time_decay));  A[t,s] = sum_i r[t,i] k[s,i] w_i^(t-1-s)
        # factorized as (r * w^t) . (k * w^(-(s+1))), zero initial state.
        # TODO(synk): re-derive chunk-relative exponents before tiling T
        # (w^(-(s+1)) overflows f32 for long chunks).
        ew = ew_ref[l]                               # (1, H) = exp(time_decay)
        u = u_ref[l]                                 # (1, H) = time_faaaa
        r_dec = r * jnp.exp(-tvec * ew)              # (T, H), f32
        k_dec = k * jnp.exp((tvec + 1.0) * ew)       # (T, H), f32

        k_rows = jnp.concatenate([k_dec] * NH, axis=0) * blk_sub   # (NH*T, H)
        v_rows = jnp.concatenate([v] * NH, axis=0) * blk_sub       # (NH*T, H)
        # lane-concatenated per-head decayed scores [A_0 | A_1 | A_2 | A_3]
        a_all = lax.dot_general(r_dec, k_rows,
                                dimension_numbers=(((1,), (1,)), ((), ())),
                                preferred_element_type=f32)        # (T, NH*T)
        # per-head u-bonus diagonal, expanded to the same lane layout (1 MXU op)
        diag = jnp.dot(r * u * k, hs_big, preferred_element_type=f32)
        a_fin = tri_big * a_all + eye_big * diag                   # (T, NH*T)
        out = jnp.dot(a_fin, v_rows, preferred_element_type=f32)   # (T, H)
        # TODO(synk): recurrent-state writeback to the paged kv_cache omitted.

        # ---- GroupNorm(num_heads, H) via one pooled-stats matmul ------------
        xo = out * (1.0 / HEAD_SIZE_DIVISOR)
        stk = jnp.concatenate([xo, xo * xo], axis=0)               # (2T, H)
        stats = jnp.dot(stk, pool, preferred_element_type=f32)     # (2T, H)
        gmean = stats[0:T]
        gvar = stats[T:2 * T] - gmean * gmean
        xo = (xo - gmean) * lax.rsqrt(gvar + EPS) * gn_g_ref[l] + gn_b_ref[l]

        attn = jnp.dot((xo * g).astype(bf16), a_wo_ref[l],
                       preferred_element_type=f32)
        x = attn + res

        # ------------------------------ mlp ----------------------------------
        res = x
        h = _ln(x, ln2_g_ref[l], ln2_b_ref[l])
        st = token_shift(h)
        y = (jnp.dot(h.astype(bf16), m_wx_ref[l], preferred_element_type=f32)
             + jnp.dot(st.astype(bf16), m_ws_ref[l], preferred_element_type=f32)
             + m_b_ref[l])                                         # (T, 128+32)
        kk = y[:, 0:INTER_PAD]                    # lane-tile aligned slices
        rr = y[:, INTER_PAD:INTER_PAD + H]
        kk = jnp.maximum(kk, 0.0)
        kk = kk * kk                              # relu(k)**2
        kv = jnp.dot(kk.astype(bf16), m_wv_ref[l],
                     preferred_element_type=f32) + m_bv_ref[l]
        x = res + jax.nn.sigmoid(rr) * kv

    o_ref[...] = _ln(x, lnout_g_ref[...], lnout_b_ref[...])


# ------------------------------ wrappers --------------------------------------
def pack_params(params):
    """Fold token-mix vectors into row-scaled weights, zero-pad the MLP hidden
    dim to 128 lanes, precompute exp(time_decay), stack per-layer params and
    cast the large matmul weights to bf16 (f32 accumulation in-kernel)."""
    def rs(tm):                                   # (1,H) -> (H,1) row scale
        return tm.reshape(-1, 1)

    bf = jnp.bfloat16
    names = ["ln1_g", "ln1_b", "ln2_g", "ln2_b", "a_wx", "a_ws", "a_wo",
             "ew", "u", "gn_g", "gn_b", "m_wx", "m_ws", "m_b", "m_wv", "m_bv"]
    stacks = {k: [] for k in names}
    for lp in params["layers"]:
        stacks["ln1_g"].append(lp["ln1_g"].reshape(1, -1))
        stacks["ln1_b"].append(lp["ln1_b"].reshape(1, -1))
        stacks["ln2_g"].append(lp["ln2_g"].reshape(1, -1))
        stacks["ln2_b"].append(lp["ln2_b"].reshape(1, -1))
        wk, wv, wr, wg = lp["a_wk"], lp["a_wv"], lp["a_wr"], lp["a_wg"]
        tk, tv, tr, tg = lp["a_tmk"], lp["a_tmv"], lp["a_tmr"], lp["a_tmg"]
        stacks["a_wx"].append(jnp.concatenate(
            [wk * rs(tk), wv * rs(tv), wr * rs(tr), wg * rs(tg)],
            axis=1).astype(bf))
        stacks["a_ws"].append(jnp.concatenate(
            [wk * rs(1 - tk), wv * rs(1 - tv), wr * rs(1 - tr),
             wg * rs(1 - tg)], axis=1).astype(bf))
        stacks["a_wo"].append(lp["a_wo"].astype(bf))
        stacks["ew"].append(jnp.exp(lp["time_decay"]).reshape(1, -1))
        stacks["u"].append(lp["time_faaaa"].reshape(1, -1))
        stacks["gn_g"].append(lp["gn_g"].reshape(1, -1))
        stacks["gn_b"].append(lp["gn_b"].reshape(1, -1))
        pad_c = INTER_PAD - INTERMEDIATE
        wkm = jnp.pad(lp["m_wk"], ((0, 0), (0, pad_c)))
        bkm = jnp.pad(lp["m_bk"], ((0, 0), (0, pad_c)))
        wvm = jnp.pad(lp["m_wv"], ((0, pad_c), (0, 0)))
        stacks["m_wx"].append(jnp.concatenate(
            [wkm * rs(lp["m_tmk"]), lp["m_wr"] * rs(lp["m_tmr"])],
            axis=1).astype(bf))
        stacks["m_ws"].append(jnp.concatenate(
            [wkm * rs(1 - lp["m_tmk"]),
             lp["m_wr"] * rs(1 - lp["m_tmr"])], axis=1).astype(bf))
        stacks["m_b"].append(jnp.concatenate([bkm, lp["m_br"]], axis=1))
        stacks["m_wv"].append(wvm.astype(bf))
        stacks["m_bv"].append(lp["m_bv"])

    packed = {k: jnp.stack(v) for k, v in stacks.items()}
    packed["emb"] = params["emb"]
    packed["pre_ln_g"] = params["pre_ln_g"].reshape(1, -1)
    packed["pre_ln_b"] = params["pre_ln_b"].reshape(1, -1)
    packed["ln_out_g"] = params["ln_out_g"].reshape(1, -1)
    packed["ln_out_b"] = params["ln_out_b"].reshape(1, -1)
    return packed


@jax.jit
def rwkv5_forward(packed, input_ids, position_ids):
    T = input_ids.shape[0]
    ids = input_ids.astype(jnp.int32).reshape(T, 1)
    posmask = (position_ids != 0).astype(jnp.float32).reshape(T, 1)
    n_in = 23
    return pl.pallas_call(
        _rwkv5_fwd_kernel,
        out_shape=jax.ShapeDtypeStruct((T, HIDDEN), jnp.float32),
        in_specs=[pl.BlockSpec(memory_space=VMEM)] * n_in,
        out_specs=pl.BlockSpec(memory_space=VMEM),
    )(ids, posmask, packed["emb"],
      packed["pre_ln_g"], packed["pre_ln_b"],
      packed["ln_out_g"], packed["ln_out_b"],
      packed["ln1_g"], packed["ln1_b"], packed["ln2_g"], packed["ln2_b"],
      packed["a_wx"], packed["a_ws"], packed["a_wo"],
      packed["ew"], packed["u"], packed["gn_g"], packed["gn_b"],
      packed["m_wx"], packed["m_ws"], packed["m_b"],
      packed["m_wv"], packed["m_bv"])


# ------------------------------ parameter init --------------------------------
def init_params(key):
    def nrm(k, shape, scale=0.02):
        return scale * jax.random.normal(k, shape, jnp.float32)

    def uni(k, shape):
        return jax.random.uniform(k, shape, jnp.float32)

    keys = iter(jax.random.split(key, 256))
    params = {
        "emb": nrm(next(keys), (VOCAB, HIDDEN), 0.1),
        "pre_ln_g": jnp.ones((HIDDEN,), jnp.float32),
        "pre_ln_b": jnp.zeros((HIDDEN,), jnp.float32),
        "ln_out_g": jnp.ones((HIDDEN,), jnp.float32),
        "ln_out_b": jnp.zeros((HIDDEN,), jnp.float32),
        "layers": [],
    }
    for _ in range(NUM_LAYERS):
        lp = {
            "ln1_g": jnp.ones((HIDDEN,), jnp.float32),
            "ln1_b": jnp.zeros((HIDDEN,), jnp.float32),
            "ln2_g": jnp.ones((HIDDEN,), jnp.float32),
            "ln2_b": jnp.zeros((HIDDEN,), jnp.float32),
            # attention
            "a_tmk": uni(next(keys), (1, HIDDEN)),
            "a_tmv": uni(next(keys), (1, HIDDEN)),
            "a_tmr": uni(next(keys), (1, HIDDEN)),
            "a_tmg": uni(next(keys), (1, HIDDEN)),
            "a_wk": nrm(next(keys), (HIDDEN, HIDDEN)),
            "a_wv": nrm(next(keys), (HIDDEN, HIDDEN)),
            "a_wr": nrm(next(keys), (HIDDEN, HIDDEN)),
            "a_wg": nrm(next(keys), (HIDDEN, HIDDEN)),
            "a_wo": nrm(next(keys), (HIDDEN, HIDDEN)),
            "time_decay": nrm(next(keys), (NUM_HEADS, HEAD_DIM), 0.5),
            "time_faaaa": nrm(next(keys), (NUM_HEADS, HEAD_DIM), 0.1),
            "gn_g": jnp.ones((HIDDEN,), jnp.float32),
            "gn_b": jnp.zeros((HIDDEN,), jnp.float32),
            # mlp
            "m_tmk": uni(next(keys), (1, HIDDEN)),
            "m_tmr": uni(next(keys), (1, HIDDEN)),
            "m_wk": nrm(next(keys), (HIDDEN, INTERMEDIATE)),
            "m_bk": nrm(next(keys), (1, INTERMEDIATE)),
            "m_wv": nrm(next(keys), (INTERMEDIATE, HIDDEN)),
            "m_bv": nrm(next(keys), (1, HIDDEN)),
            "m_wr": nrm(next(keys), (HIDDEN, HIDDEN)),
            "m_br": nrm(next(keys), (1, HIDDEN)),
        }
        params["layers"].append(lp)
    return params


# ---------------------------------- main ---------------------------------------
if __name__ == "__main__":
    params = init_params(jax.random.PRNGKey(0))
    packed = pack_params(params)
    input_ids = jax.random.randint(jax.random.PRNGKey(1), (SEQ,), 0, VOCAB)
    position_ids = jnp.arange(SEQ, dtype=jnp.int32)

    out = rwkv5_forward(packed, input_ids, position_ids)
    out = jax.block_until_ready(out)

    assert out.shape == (SEQ, HIDDEN), out.shape
    assert bool(jnp.all(jnp.isfinite(out)))
    print("KERNEL_OK")
</pallas_src>

<mosaic_0001>
module attributes {stable_mosaic.version = 11 : i64} {
  func.func @_rwkv5_fwd_kernel(%arg0: memref<8x1xi32, #tpu.memory_space<vmem>>, %arg1: memref<8x1xf32, #tpu.memory_space<vmem>>, %arg2: memref<64x32xf32, #tpu.memory_space<vmem>>, %arg3: memref<1x32xf32, #tpu.memory_space<vmem>>, %arg4: memref<1x32xf32, #tpu.memory_space<vmem>>, %arg5: memref<1x32xf32, #tpu.memory_space<vmem>>, %arg6: memref<1x32xf32, #tpu.memory_space<vmem>>, %arg7: memref<2x1x32xf32, #tpu.memory_space<vmem>>, %arg8: memref<2x1x32xf32, #tpu.memory_space<vmem>>, %arg9: memref<2x1x32xf32, #tpu.memory_space<vmem>>, %arg10: memref<2x1x32xf32, #tpu.memory_space<vmem>>, %arg11: memref<2x32x128xbf16, #tpu.memory_space<vmem>>, %arg12: memref<2x32x128xbf16, #tpu.memory_space<vmem>>, %arg13: memref<2x32x32xbf16, #tpu.memory_space<vmem>>, %arg14: memref<2x1x32xf32, #tpu.memory_space<vmem>>, %arg15: memref<2x1x32xf32, #tpu.memory_space<vmem>>, %arg16: memref<2x1x32xf32, #tpu.memory_space<vmem>>, %arg17: memref<2x1x32xf32, #tpu.memory_space<vmem>>, %arg18: memref<2x32x160xbf16, #tpu.memory_space<vmem>>, %arg19: memref<2x32x160xbf16, #tpu.memory_space<vmem>>, %arg20: memref<2x1x160xf32, #tpu.memory_space<vmem>>, %arg21: memref<2x128x32xbf16, #tpu.memory_space<vmem>>, %arg22: memref<2x1x32xf32, #tpu.memory_space<vmem>>, %arg23: memref<8x32xf32, #tpu.memory_space<vmem>>) attributes {dimension_semantics = [], scalar_prefetch = 0 : i64, scratch_operands = 0 : i64, tpu.core_type = #tpu.core_type<tc>} {
    %c0 = arith.constant 0 : index
    %c0_0 = arith.constant 0 : index
    %0 = vector.load %arg1[%c0, %c0_0] : memref<8x1xf32, #tpu.memory_space<vmem>>, vector<8x1xf32>
    %1 = tpu.iota {dimensions = array<i32: 0>} : vector<32x32xi32>
    %2 = tpu.iota {dimensions = array<i32: 1>} : vector<32x32xi32>
    %c3_i32 = arith.constant 3 : i32
    %3 = vector.broadcast %c3_i32 : i32 to vector<32x32xi32>
    %4 = arith.shrsi %1, %3 : vector<32x32xi32>
    %c3_i32_1 = arith.constant 3 : i32
    %5 = vector.broadcast %c3_i32_1 : i32 to vector<32x32xi32>
    %6 = arith.shrsi %2, %5 : vector<32x32xi32>
    %7 = arith.cmpi eq, %4, %6 : vector<32x32xi32>
    %8 = arith.extui %7 : vector<32x32xi1> to vector<32x32xi32>
    %9 = arith.sitofp %8 : vector<32x32xi32> to vector<32x32xf32>
    %10 = tpu.iota {dimensions = array<i32: 0>} : vector<32x32xi32>
    %11 = tpu.iota {dimensions = array<i32: 1>} : vector<32x32xi32>
    %c3_i32_2 = arith.constant 3 : i32
    %12 = vector.broadcast %c3_i32_2 : i32 to vector<32x32xi32>
    %13 = arith.shrsi %10, %12 : vector<32x32xi32>
    %c3_i32_3 = arith.constant 3 : i32
    %14 = vector.broadcast %c3_i32_3 : i32 to vector<32x32xi32>
    %15 = arith.shrsi %11, %14 : vector<32x32xi32>
    %16 = arith.cmpi eq, %13, %15 : vector<32x32xi32>
    %17 = arith.extui %16 : vector<32x32xi1> to vector<32x32xi32>
    %18 = arith.sitofp %17 : vector<32x32xi32> to vector<32x32xf32>
    %19 = tpu.iota {dimensions = array<i32: 0>} : vector<8x32xi32>
    %20 = tpu.iota {dimensions = array<i32: 1>} : vector<8x32xi32>
    %c7_i32 = arith.constant 7 : i32
    %21 = vector.broadcast %c7_i32 : i32 to vector<8x32xi32>
    %22 = arith.andi %20, %21 : vector<8x32xi32>
    %23 = arith.cmpi sgt, %19, %22 : vector<8x32xi32>
    %24 = arith.extui %23 : vector<8x32xi1> to vector<8x32xi32>
    %25 = arith.sitofp %24 : vector<8x32xi32> to vector<8x32xf32>
    %26 = arith.cmpi eq, %19, %22 : vector<8x32xi32>
    %27 = arith.extui %26 : vector<8x32xi1> to vector<8x32xi32>
    %28 = arith.sitofp %27 : vector<8x32xi32> to vector<8x32xf32>
    %29 = tpu.iota {dimensions = array<i32: 0>} : vector<32x32xi32>
    %30 = tpu.iota {dimensions = array<i32: 1>} : vector<32x32xi32>
    %c3_i32_4 = arith.constant 3 : i32
    %31 = vector.broadcast %c3_i32_4 : i32 to vector<32x32xi32>
    %32 = arith.shrsi %29, %31 : vector<32x32xi32>
    %c3_i32_5 = arith.constant 3 : i32
    %33 = vector.broadcast %c3_i32_5 : i32 to vector<32x32xi32>
    %34 = arith.shrsi %30, %33 : vector<32x32xi32>
    %35 = arith.cmpi eq, %32, %34 : vector<32x32xi32>
    %36 = arith.extui %35 : vector<32x32xi1> to vector<32x32xi32>
    %37 = arith.sitofp %36 : vector<32x32xi32> to vector<32x32xf32>
    %cst = arith.constant 1.250000e-01 : f32
    %38 = vector.broadcast %cst : f32 to vector<32x32xf32>
    %39 = arith.mulf %37, %38 : vector<32x32xf32>
    %40 = tpu.iota {dimensions = array<i32: 0>} : vector<8x1xi32>
    %41 = arith.sitofp %40 : vector<8x1xi32> to vector<8x1xf32>
    %c0_6 = arith.constant 0 : index
    %c0_7 = arith.constant 0 : index
    %42 = vector.load %arg0[%c0_6, %c0_7] : memref<8x1xi32, #tpu.memory_space<vmem>>, vector<8x1xi32>
    %43 = tpu.iota {dimensions = array<i32: 1>} : vector<8x64xi32>
    %44 = vector.broadcast %42 : vector<8x1xi32> to vector<8x64xi32>
    %45 = arith.cmpi eq, %44, %43 : vector<8x64xi32>
    %46 = arith.extui %45 : vector<8x64xi1> to vector<8x64xi32>
    %47 = arith.sitofp %46 : vector<8x64xi32> to vector<8x64xf32>
    %c0_8 = arith.constant 0 : index
    %c0_9 = arith.constant 0 : index
    %48 = vector.load %arg2[%c0_8, %c0_9] : memref<64x32xf32, #tpu.memory_space<vmem>>, vector<64x32xf32>
    %cst_10 = arith.constant dense<0.000000e+00> : vector<8x32xf32>
    %49 = tpu.matmul %47, %48, %cst_10 {dimension_numbers = #tpu.dot_dimension_numbers<[1], [0], [0], [1], [0, 0, 1, 1], [], []>} : vector<8x64xf32>, vector<64x32xf32>, vector<8x32xf32> -> vector<8x32xf32>
    %c0_11 = arith.constant 0 : index
    %c0_12 = arith.constant 0 : index
    %50 = vector.load %arg3[%c0_11, %c0_12] : memref<1x32xf32, #tpu.memory_space<vmem>>, vector<1x32xf32>
    %c0_13 = arith.constant 0 : index
    %c0_14 = arith.constant 0 : index
    %51 = vector.load %arg4[%c0_13, %c0_14] : memref<1x32xf32, #tpu.memory_space<vmem>>, vector<1x32xf32>
    %cst_15 = arith.constant dense<0.000000e+00> : vector<8xf32>
    %52 = vector.multi_reduction <add>, %49, %cst_15 [1] : vector<8x32xf32> to vector<8xf32>
    %53 = vector.shape_cast %52 : vector<8xf32> to vector<8x1xf32>
    %cst_16 = arith.constant 3.200000e+01 : f32
    %54 = vector.broadcast %cst_16 : f32 to vector<8x1xf32>
    %55 = arith.divf %53, %54 : vector<8x1xf32>
    %56 = vector.broadcast %55 : vector<8x1xf32> to vector<8x32xf32>
    %57 = arith.subf %49, %56 : vector<8x32xf32>
    %58 = arith.mulf %57, %57 : vector<8x32xf32>
    %cst_17 = arith.constant dense<0.000000e+00> : vector<8xf32>
    %59 = vector.multi_reduction <add>, %58, %cst_17 [1] : vector<8x32xf32> to vector<8xf32>
    %60 = vector.shape_cast %59 : vector<8xf32> to vector<8x1xf32>
    %cst_18 = arith.constant 3.200000e+01 : f32
    %61 = vector.broadcast %cst_18 : f32 to vector<8x1xf32>
    %62 = arith.divf %60, %61 : vector<8x1xf32>
    %63 = vector.broadcast %55 : vector<8x1xf32> to vector<8x32xf32>
    %64 = arith.subf %49, %63 : vector<8x32xf32>
    %cst_19 = arith.constant 9.99999974E-6 : f32
    %65 = vector.broadcast %cst_19 : f32 to vector<8x1xf32>
    %66 = arith.addf %62, %65 : vector<8x1xf32>
    %67 = math.rsqrt %66 : vector<8x1xf32>
    %68 = vector.broadcast %67 : vector<8x1xf32> to vector<8x32xf32>
    %69 = arith.mulf %64, %68 : vector<8x32xf32>
    %70 = vector.broadcast %50 : vector<1x32xf32> to vector<8x32xf32>
    %71 = arith.mulf %69, %70 : vector<8x32xf32>
    %72 = vector.broadcast %51 : vector<1x32xf32> to vector<8x32xf32>
    %73 = arith.addf %71, %72 : vector<8x32xf32>
    %c0_20 = arith.constant 0 : index
    %c0_21 = arith.constant 0 : index
    %c0_22 = arith.constant 0 : index
    %74 = vector.load %arg7[%c0_20, %c0_21, %c0_22] : memref<2x1x32xf32, #tpu.memory_space<vmem>>, vector<1x1x32xf32>
    %75 = vector.shape_cast %74 : vector<1x1x32xf32> to vector<1x32xf32>
    %c0_23 = arith.constant 0 : index
    %c0_24 = arith.constant 0 : index
    %c0_25 = arith.constant 0 : index
    %76 = vector.load %arg8[%c0_23, %c0_24, %c0_25] : memref<2x1x32xf32, #tpu.memory_space<vmem>>, vector<1x1x32xf32>
    %77 = vector.shape_cast %76 : vector<1x1x32xf32> to vector<1x32xf32>
    %cst_26 = arith.constant dense<0.000000e+00> : vector<8xf32>
    %78 = vector.multi_reduction <add>, %73, %cst_26 [1] : vector<8x32xf32> to vector<8xf32>
    %79 = vector.shape_cast %78 : vector<8xf32> to vector<8x1xf32>
    %cst_27 = arith.constant 3.200000e+01 : f32
    %80 = vector.broadcast %cst_27 : f32 to vector<8x1xf32>
    %81 = arith.divf %79, %80 : vector<8x1xf32>
    %82 = vector.broadcast %81 : vector<8x1xf32> to vector<8x32xf32>
    %83 = arith.subf %73, %82 : vector<8x32xf32>
    %84 = arith.mulf %83, %83 : vector<8x32xf32>
    %cst_28 = arith.constant dense<0.000000e+00> : vector<8xf32>
    %85 = vector.multi_reduction <add>, %84, %cst_28 [1] : vector<8x32xf32> to vector<8xf32>
    %86 = vector.shape_cast %85 : vector<8xf32> to vector<8x1xf32>
    %cst_29 = arith.constant 3.200000e+01 : f32
    %87 = vector.broadcast %cst_29 : f32 to vector<8x1xf32>
    %88 = arith.divf %86, %87 : vector<8x1xf32>
    %89 = vector.broadcast %81 : vector<8x1xf32> to vector<8x32xf32>
    %90 = arith.subf %73, %89 : vector<8x32xf32>
    %cst_30 = arith.constant 9.99999974E-6 : f32
    %91 = vector.broadcast %cst_30 : f32 to vector<8x1xf32>
    %92 = arith.addf %88, %91 : vector<8x1xf32>
    %93 = math.rsqrt %92 : vector<8x1xf32>
    %94 = vector.broadcast %93 : vector<8x1xf32> to vector<8x32xf32>
    %95 = arith.mulf %90, %94 : vector<8x32xf32>
    %96 = vector.broadcast %75 : vector<1x32xf32> to vector<8x32xf32>
    %97 = arith.mulf %95, %96 : vector<8x32xf32>
    %98 = vector.broadcast %77 : vector<1x32xf32> to vector<8x32xf32>
    %99 = arith.addf %97, %98 : vector<8x32xf32>
    %c1_i32 = arith.constant 1 : i32
    %100 = tpu.dynamic_rotate %99 by %c1_i32 dim 0 : vector<8x32xf32>, i32 -> vector<8x32xf32>
    %101 = vector.broadcast %0 : vector<8x1xf32> to vector<8x32xf32>
    %102 = arith.mulf %100, %101 : vector<8x32xf32>
    %103 = arith.truncf %99 : vector<8x32xf32> to vector<8x32xbf16>
    %c0_31 = arith.constant 0 : index
    %c0_32 = arith.constant 0 : index
    %c0_33 = arith.constant 0 : index
    %104 = vector.load %arg11[%c0_31, %c0_32, %c0_33] : memref<2x32x128xbf16, #tpu.memory_space<vmem>>, vector<1x32x128xbf16>
    %105 = vector.shape_cast %104 : vector<1x32x128xbf16> to vector<32x128xbf16>
    %cst_34 = arith.constant dense<0.000000e+00> : vector<8x128xf32>
    %106 = tpu.matmul %103, %105, %cst_34 {dimension_numbers = #tpu.dot_dimension_numbers<[1], [0], [0], [1], [0, 0, 1, 1], [], []>} : vector<8x32xbf16>, vector<32x128xbf16>, vector<8x128xf32> -> vector<8x128xf32>
    %107 = arith.truncf %102 : vector<8x32xf32> to vector<8x32xbf16>
    %c0_35 = arith.constant 0 : index
    %c0_36 = arith.constant 0 : index
    %c0_37 = arith.constant 0 : index
    %108 = vector.load %arg12[%c0_35, %c0_36, %c0_37] : memref<2x32x128xbf16, #tpu.memory_space<vmem>>, vector<1x32x128xbf16>
    %109 = vector.shape_cast %108 : vector<1x32x128xbf16> to vector<32x128xbf16>
    %cst_38 = arith.constant dense<0.000000e+00> : vector<8x128xf32>
    %110 = tpu.matmul %107, %109, %cst_38 {dimension_numbers = #tpu.dot_dimension_numbers<[1], [0], [0], [1], [0, 0, 1, 1], [], []>} : vector<8x32xbf16>, vector<32x128xbf16>, vector<8x128xf32> -> vector<8x128xf32>
    %111 = arith.addf %106, %110 : vector<8x128xf32>
    %112 = vector.extract_strided_slice %111 {offsets = [0, 0], sizes = [8, 32], strides = [1, 1]} : vector<8x128xf32> to vector<8x32xf32>
    %113 = vector.extract_strided_slice %111 {offsets = [0, 32], sizes = [8, 32], strides = [1, 1]} : vector<8x128xf32> to vector<8x32xf32>
    %114 = vector.extract_strided_slice %111 {offsets = [0, 64], sizes = [8, 32], strides = [1, 1]} : vector<8x128xf32> to vector<8x32xf32>
    %115 = vector.extract_strided_slice %111 {offsets = [0, 96], sizes = [8, 32], strides = [1, 1]} : vector<8x128xf32> to vector<8x32xf32>
    %116 = arith.negf %115 : vector<8x32xf32>
    %117 = math.exp %116 : vector<8x32xf32>
    %cst_39 = arith.constant 1.000000e+00 : f32
    %118 = vector.broadcast %cst_39 : f32 to vector<8x32xf32>
    %119 = arith.addf %118, %117 : vector<8x32xf32>
    %120 = arith.divf %118, %119 : vector<8x32xf32>
    %121 = arith.mulf %115, %120 : vector<8x32xf32>
    %c0_40 = arith.constant 0 : index
    %c0_41 = arith.constant 0 : index
    %c0_42 = arith.constant 0 : index
    %122 = vector.load %arg14[%c0_40, %c0_41, %c0_42] : memref<2x1x32xf32, #tpu.memory_space<vmem>>, vector<1x1x32xf32>
    %123 = vector.shape_cast %122 : vector<1x1x32xf32> to vector<1x32xf32>
    %c0_43 = arith.constant 0 : index
    %c0_44 = arith.constant 0 : index
    %c0_45 = arith.constant 0 : index
    %124 = vector.load %arg15[%c0_43, %c0_44, %c0_45] : memref<2x1x32xf32, #tpu.memory_space<vmem>>, vector<1x1x32xf32>
    %125 = vector.shape_cast %124 : vector<1x1x32xf32> to vector<1x32xf32>
    %cst_46 = arith.constant 0.000000e+00 : f32
    %126 = vector.broadcast %cst_46 : f32 to vector<8x1xf32>
    %127 = arith.subf %126, %41 : vector<8x1xf32>
    %128 = vector.broadcast %127 : vector<8x1xf32> to vector<8x32xf32>
    %129 = vector.broadcast %123 : vector<1x32xf32> to vector<8x32xf32>
    %130 = arith.mulf %128, %129 : vector<8x32xf32>
    %131 = math.exp %130 : vector<8x32xf32>
    %132 = arith.mulf %114, %131 : vector<8x32xf32>
    %cst_47 = arith.constant 1.000000e+00 : f32
    %133 = vector.broadcast %cst_47 : f32 to vector<8x1xf32>
    %134 = arith.addf %41, %133 : vector<8x1xf32>
    %135 = vector.broadcast %134 : vector<8x1xf32> to vector<8x32xf32>
    %136 = vector.broadcast %123 : vector<1x32xf32> to vector<8x32xf32>
    %137 = arith.mulf %135, %136 : vector<8x32xf32>
    %138 = math.exp %137 : vector<8x32xf32>
    %139 = arith.mulf %112, %138 : vector<8x32xf32>
    %140 = tpu.concatenate %139, %139, %139, %139 in 0 : vector<8x32xf32>, vector<8x32xf32>, vector<8x32xf32>, vector<8x32xf32> -> vector<32x32xf32>
    %141 = arith.mulf %140, %9 : vector<32x32xf32>
    %142 = tpu.concatenate %113, %113, %113, %113 in 0 : vector<8x32xf32>, vector<8x32xf32>, vector<8x32xf32>, vector<8x32xf32> -> vector<32x32xf32>
    %143 = arith.mulf %142, %9 : vector<32x32xf32>
    %cst_48 = arith.constant dense<0.000000e+00> : vector<8x32xf32>
    %144 = tpu.matmul %132, %141, %cst_48 {dimension_numbers = #tpu.dot_dimension_numbers<[1], [1], [0], [0], [0, 0, 1, 0], [], []>} : vector<8x32xf32>, vector<32x32xf32>, vector<8x32xf32> -> vector<8x32xf32>
    %145 = vector.broadcast %125 : vector<1x32xf32> to vector<8x32xf32>
    %146 = arith.mulf %114, %145 : vector<8x32xf32>
    %147 = arith.mulf %146, %112 : vector<8x32xf32>
    %cst_49 = arith.constant dense<0.000000e+00> : vector<8x32xf32>
    %148 = tpu.matmul %147, %18, %cst_49 {dimension_numbers = #tpu.dot_dimension_numbers<[1], [0], [0], [1], [0, 0, 1, 1], [], []>} : vector<8x32xf32>, vector<32x32xf32>, vector<8x32xf32> -> vector<8x32xf32>
    %149 = arith.mulf %25, %144 : vector<8x32xf32>
    %150 = arith.mulf %28, %148 : vector<8x32xf32>
    %151 = arith.addf %149, %150 : vector<8x32xf32>
    %cst_50 = arith.constant dense<0.000000e+00> : vector<8x32xf32>
    %152 = tpu.matmul %151, %143, %cst_50 {dimension_numbers = #tpu.dot_dimension_numbers<[1], [0], [0], [1], [0, 0, 1, 1], [], []>} : vector<8x32xf32>, vector<32x32xf32>, vector<8x32xf32> -> vector<8x32xf32>
    %cst_51 = arith.constant 1.250000e-01 : f32
    %153 = vector.broadcast %cst_51 : f32 to vector<8x32xf32>
    %154 = arith.mulf %152, %153 : vector<8x32xf32>
    %155 = arith.mulf %154, %154 : vector<8x32xf32>
    %156 = tpu.concatenate %154, %155 in 0 : vector<8x32xf32>, vector<8x32xf32> -> vector<16x32xf32>
    %cst_52 = arith.constant dense<0.000000e+00> : vector<16x32xf32>
    %157 = tpu.matmul %156, %39, %cst_52 {dimension_numbers = #tpu.dot_dimension_numbers<[1], [0], [0], [1], [0, 0, 1, 1], [], []>} : vector<16x32xf32>, vector<32x32xf32>, vector<16x32xf32> -> vector<16x32xf32>
    %158 = vector.extract_strided_slice %157 {offsets = [0, 0], sizes = [8, 32], strides = [1, 1]} : vector<16x32xf32> to vector<8x32xf32>
    %159 = vector.extract_strided_slice %157 {offsets = [8, 0], sizes = [8, 32], strides = [1, 1]} : vector<16x32xf32> to vector<8x32xf32>
    %160 = arith.mulf %158, %158 : vector<8x32xf32>
    %161 = arith.subf %159, %160 : vector<8x32xf32>
    %162 = arith.subf %154, %158 : vector<8x32xf32>
    %cst_53 = arith.constant 9.99999974E-6 : f32
    %163 = vector.broadcast %cst_53 : f32 to vector<8x32xf32>
    %164 = arith.addf %161, %163 : vector<8x32xf32>
    %165 = math.rsqrt %164 : vector<8x32xf32>
    %166 = arith.mulf %162, %165 : vector<8x32xf32>
    %c0_54 = arith.constant 0 : index
    %c0_55 = arith.constant 0 : index
    %c0_56 = arith.constant 0 : index
    %167 = vector.load %arg16[%c0_54, %c0_55, %c0_56] : memref<2x1x32xf32, #tpu.memory_space<vmem>>, vector<1x1x32xf32>
    %168 = vector.shape_cast %167 : vector<1x1x32xf32> to vector<1x32xf32>
    %169 = vector.broadcast %168 : vector<1x32xf32> to vector<8x32xf32>
    %170 = arith.mulf %166, %169 : vector<8x32xf32>
    %c0_57 = arith.constant 0 : index
    %c0_58 = arith.constant 0 : index
    %c0_59 = arith.constant 0 : index
    %171 = vector.load %arg17[%c0_57, %c0_58, %c0_59] : memref<2x1x32xf32, #tpu.memory_space<vmem>>, vector<1x1x32xf32>
    %172 = vector.shape_cast %171 : vector<1x1x32xf32> to vector<1x32xf32>
    %173 = vector.broadcast %172 : vector<1x32xf32> to vector<8x32xf32>
    %174 = arith.addf %170, %173 : vector<8x32xf32>
    %175 = arith.mulf %174, %121 : vector<8x32xf32>
    %176 = arith.truncf %175 : vector<8x32xf32> to vector<8x32xbf16>
    %c0_60 = arith.constant 0 : index
    %c0_61 = arith.constant 0 : index
    %c0_62 = arith.constant 0 : index
    %177 = vector.load %arg13[%c0_60, %c0_61, %c0_62] : memref<2x32x32xbf16, #tpu.memory_space<vmem>>, vector<1x32x32xbf16>
    %178 = vector.shape_cast %177 : vector<1x32x32xbf16> to vector<32x32xbf16>
    %cst_63 = arith.constant dense<0.000000e+00> : vector<8x32xf32>
    %179 = tpu.matmul %176, %178, %cst_63 {dimension_numbers = #tpu.dot_dimension_numbers<[1], [0], [0], [1], [0, 0, 1, 1], [], []>} : vector<8x32xbf16>, vector<32x32xbf16>, vector<8x32xf32> -> vector<8x32xf32>
    %180 = arith.addf %179, %73 : vector<8x32xf32>
    %c0_64 = arith.constant 0 : index
    %c0_65 = arith.constant 0 : index
    %c0_66 = arith.constant 0 : index
    %181 = vector.load %arg9[%c0_64, %c0_65, %c0_66] : memref<2x1x32xf32, #tpu.memory_space<vmem>>, vector<1x1x32xf32>
    %182 = vector.shape_cast %181 : vector<1x1x32xf32> to vector<1x32xf32>
    %c0_67 = arith.constant 0 : index
    %c0_68 = arith.constant 0 : index
    %c0_69 = arith.constant 0 : index
    %183 = vector.load %arg10[%c0_67, %c0_68, %c0_69] : memref<2x1x32xf32, #tpu.memory_space<vmem>>, vector<1x1x32xf32>
    %184 = vector.shape_cast %183 : vector<1x1x32xf32> to vector<1x32xf32>
    %cst_70 = arith.constant dense<0.000000e+00> : vector<8xf32>
    %185 = vector.multi_reduction <add>, %180, %cst_70 [1] : vector<8x32xf32> to vector<8xf32>
    %186 = vector.shape_cast %185 : vector<8xf32> to vector<8x1xf32>
    %cst_71 = arith.constant 3.200000e+01 : f32
    %187 = vector.broadcast %cst_71 : f32 to vector<8x1xf32>
    %188 = arith.divf %186, %187 : vector<8x1xf32>
    %189 = vector.broadcast %188 : vector<8x1xf32> to vector<8x32xf32>
    %190 = arith.subf %180, %189 : vector<8x32xf32>
    %191 = arith.mulf %190, %190 : vector<8x32xf32>
    %cst_72 = arith.constant dense<0.000000e+00> : vector<8xf32>
    %192 = vector.multi_reduction <add>, %191, %cst_72 [1] : vector<8x32xf32> to vector<8xf32>
    %193 = vector.shape_cast %192 : vector<8xf32> to vector<8x1xf32>
    %cst_73 = arith.constant 3.200000e+01 : f32
    %194 = vector.broadcast %cst_73 : f32 to vector<8x1xf32>
    %195 = arith.divf %193, %194 : vector<8x1xf32>
    %196 = vector.broadcast %188 : vector<8x1xf32> to vector<8x32xf32>
    %197 = arith.subf %180, %196 : vector<8x32xf32>
    %cst_74 = arith.constant 9.99999974E-6 : f32
    %198 = vector.broadcast %cst_74 : f32 to vector<8x1xf32>
    %199 = arith.addf %195, %198 : vector<8x1xf32>
    %200 = math.rsqrt %199 : vector<8x1xf32>
    %201 = vector.broadcast %200 : vector<8x1xf32> to vector<8x32xf32>
    %202 = arith.mulf %197, %201 : vector<8x32xf32>
    %203 = vector.broadcast %182 : vector<1x32xf32> to vector<8x32xf32>
    %204 = arith.mulf %202, %203 : vector<8x32xf32>
    %205 = vector.broadcast %184 : vector<1x32xf32> to vector<8x32xf32>
    %206 = arith.addf %204, %205 : vector<8x32xf32>
    %c1_i32_75 = arith.constant 1 : i32
    %207 = tpu.dynamic_rotate %206 by %c1_i32_75 dim 0 : vector<8x32xf32>, i32 -> vector<8x32xf32>
    %208 = vector.broadcast %0 : vector<8x1xf32> to vector<8x32xf32>
    %209 = arith.mulf %207, %208 : vector<8x32xf32>
    %210 = arith.truncf %206 : vector<8x32xf32> to vector<8x32xbf16>
    %c0_76 = arith.constant 0 : index
    %c0_77 = arith.constant 0 : index
    %c0_78 = arith.constant 0 : index
    %211 = vector.load %arg18[%c0_76, %c0_77, %c0_78] : memref<2x32x160xbf16, #tpu.memory_space<vmem>>, vector<1x32x160xbf16>
    %212 = vector.shape_cast %211 : vector<1x32x160xbf16> to vector<32x160xbf16>
    %cst_79 = arith.constant dense<0.000000e+00> : vector<8x160xf32>
    %213 = tpu.matmul %210, %212, %cst_79 {dimension_numbers = #tpu.dot_dimension_numbers<[1], [0], [0], [1], [0, 0, 1, 1], [], []>} : vector<8x32xbf16>, vector<32x160xbf16>, vector<8x160xf32> -> vector<8x160xf32>
    %214 = arith.truncf %209 : vector<8x32xf32> to vector<8x32xbf16>
    %c0_80 = arith.constant 0 : index
    %c0_81 = arith.constant 0 : index
    %c0_82 = arith.constant 0 : index
    %215 = vector.load %arg19[%c0_80, %c0_81, %c0_82] : memref<2x32x160xbf16, #tpu.memory_space<vmem>>, vector<1x32x160xbf16>
    %216 = vector.shape_cast %215 : vector<1x32x160xbf16> to vector<32x160xbf16>
    %cst_83 = arith.constant dense<0.000000e+00> : vector<8x160xf32>
    %217 = tpu.matmul %214, %216, %cst_83 {dimension_numbers = #tpu.dot_dimension_numbers<[1], [0], [0], [1], [0, 0, 1, 1], [], []>} : vector<8x32xbf16>, vector<32x160xbf16>, vector<8x160xf32> -> vector<8x160xf32>
    %218 = arith.addf %213, %217 : vector<8x160xf32>
    %c0_84 = arith.constant 0 : index
    %c0_85 = arith.constant 0 : index
    %c0_86 = arith.constant 0 : index
    %219 = vector.load %arg20[%c0_84, %c0_85, %c0_86] : memref<2x1x160xf32, #tpu.memory_space<vmem>>, vector<1x1x160xf32>
    %220 = vector.shape_cast %219 : vector<1x1x160xf32> to vector<1x160xf32>
    %221 = vector.broadcast %220 : vector<1x160xf32> to vector<8x160xf32>
    %222 = arith.addf %218, %221 : vector<8x160xf32>
    %223 = vector.extract_strided_slice %222 {offsets = [0, 0], sizes = [8, 128], strides = [1, 1]} : vector<8x160xf32> to vector<8x128xf32>
    %224 = vector.extract_strided_slice %222 {offsets = [0, 128], sizes = [8, 32], strides = [1, 1]} : vector<8x160xf32> to vector<8x32xf32>
    %cst_87 = arith.constant 0.000000e+00 : f32
    %225 = vector.broadcast %cst_87 : f32 to vector<8x128xf32>
    %226 = arith.maximumf %223, %225 : vector<8x128xf32>
    %227 = arith.mulf %226, %226 : vector<8x128xf32>
    %228 = arith.truncf %227 : vector<8x128xf32> to vector<8x128xbf16>
    %c0_88 = arith.constant 0 : index
    %c0_89 = arith.constant 0 : index
    %c0_90 = arith.constant 0 : index
    %229 = vector.load %arg21[%c0_88, %c0_89, %c0_90] : memref<2x128x32xbf16, #tpu.memory_space<vmem>>, vector<1x128x32xbf16>
    %230 = vector.shape_cast %229 : vector<1x128x32xbf16> to vector<128x32xbf16>
    %cst_91 = arith.constant dense<0.000000e+00> : vector<8x32xf32>
    %231 = tpu.matmul %228, %230, %cst_91 {dimension_numbers = #tpu.dot_dimension_numbers<[1], [0], [0], [1], [0, 0, 1, 1], [], []>} : vector<8x128xbf16>, vector<128x32xbf16>, vector<8x32xf32> -> vector<8x32xf32>
    %c0_92 = arith.constant 0 : index
    %c0_93 = arith.constant 0 : index
    %c0_94 = arith.constant 0 : index
    %232 = vector.load %arg22[%c0_92, %c0_93, %c0_94] : memref<2x1x32xf32, #tpu.memory_space<vmem>>, vector<1x1x32xf32>
    %233 = vector.shape_cast %232 : vector<1x1x32xf32> to vector<1x32xf32>
    %234 = vector.broadcast %233 : vector<1x32xf32> to vector<8x32xf32>
    %235 = arith.addf %231, %234 : vector<8x32xf32>
    %236 = arith.negf %224 : vector<8x32xf32>
    %237 = math.exp %236 : vector<8x32xf32>
    %cst_95 = arith.constant 1.000000e+00 : f32
    %238 = vector.broadcast %cst_95 : f32 to vector<8x32xf32>
    %239 = arith.addf %238, %237 : vector<8x32xf32>
    %240 = arith.divf %238, %239 : vector<8x32xf32>
    %241 = arith.mulf %240, %235 : vector<8x32xf32>
    %242 = arith.addf %180, %241 : vector<8x32xf32>
    %c1 = arith.constant 1 : index
    %c0_96 = arith.constant 0 : index
    %c0_97 = arith.constant 0 : index
    %243 = vector.load %arg7[%c1, %c0_96, %c0_97] : memref<2x1x32xf32, #tpu.memory_space<vmem>>, vector<1x1x32xf32>
    %244 = vector.shape_cast %243 : vector<1x1x32xf32> to vector<1x32xf32>
    %c1_98 = arith.constant 1 : index
    %c0_99 = arith.constant 0 : index
    %c0_100 = arith.constant 0 : index
    %245 = vector.load %arg8[%c1_98, %c0_99, %c0_100] : memref<2x1x32xf32, #tpu.memory_space<vmem>>, vector<1x1x32xf32>
    %246 = vector.shape_cast %245 : vector<1x1x32xf32> to vector<1x32xf32>
    %cst_101 = arith.constant dense<0.000000e+00> : vector<8xf32>
    %247 = vector.multi_reduction <add>, %242, %cst_101 [1] : vector<8x32xf32> to vector<8xf32>
    %248 = vector.shape_cast %247 : vector<8xf32> to vector<8x1xf32>
    %cst_102 = arith.constant 3.200000e+01 : f32
    %249 = vector.broadcast %cst_102 : f32 to vector<8x1xf32>
    %250 = arith.divf %248, %249 : vector<8x1xf32>
    %251 = vector.broadcast %250 : vector<8x1xf32> to vector<8x32xf32>
    %252 = arith.subf %242, %251 : vector<8x32xf32>
    %253 = arith.mulf %252, %252 : vector<8x32xf32>
    %cst_103 = arith.constant dense<0.000000e+00> : vector<8xf32>
    %254 = vector.multi_reduction <add>, %253, %cst_103 [1] : vector<8x32xf32> to vector<8xf32>
    %255 = vector.shape_cast %254 : vector<8xf32> to vector<8x1xf32>
    %cst_104 = arith.constant 3.200000e+01 : f32
    %256 = vector.broadcast %cst_104 : f32 to vector<8x1xf32>
    %257 = arith.divf %255, %256 : vector<8x1xf32>
    %258 = vector.broadcast %250 : vector<8x1xf32> to vector<8x32xf32>
    %259 = arith.subf %242, %258 : vector<8x32xf32>
    %cst_105 = arith.constant 9.99999974E-6 : f32
    %260 = vector.broadcast %cst_105 : f32 to vector<8x1xf32>
    %261 = arith.addf %257, %260 : vector<8x1xf32>
    %262 = math.rsqrt %261 : vector<8x1xf32>
    %263 = vector.broadcast %262 : vector<8x1xf32> to vector<8x32xf32>
    %264 = arith.mulf %259, %263 : vector<8x32xf32>
    %265 = vector.broadcast %244 : vector<1x32xf32> to vector<8x32xf32>
    %266 = arith.mulf %264, %265 : vector<8x32xf32>
    %267 = vector.broadcast %246 : vector<1x32xf32> to vector<8x32xf32>
    %268 = arith.addf %266, %267 : vector<8x32xf32>
    %c1_i32_106 = arith.constant 1 : i32
    %269 = tpu.dynamic_rotate %268 by %c1_i32_106 dim 0 : vector<8x32xf32>, i32 -> vector<8x32xf32>
    %270 = vector.broadcast %0 : vector<8x1xf32> to vector<8x32xf32>
    %271 = arith.mulf %269, %270 : vector<8x32xf32>
    %272 = arith.truncf %268 : vector<8x32xf32> to vector<8x32xbf16>
    %c1_107 = arith.constant 1 : index
    %c0_108 = arith.constant 0 : index
    %c0_109 = arith.constant 0 : index
    %273 = vector.load %arg11[%c1_107, %c0_108, %c0_109] : memref<2x32x128xbf16, #tpu.memory_space<vmem>>, vector<1x32x128xbf16>
    %274 = vector.shape_cast %273 : vector<1x32x128xbf16> to vector<32x128xbf16>
    %cst_110 = arith.constant dense<0.000000e+00> : vector<8x128xf32>
    %275 = tpu.matmul %272, %274, %cst_110 {dimension_numbers = #tpu.dot_dimension_numbers<[1], [0], [0], [1], [0, 0, 1, 1], [], []>} : vector<8x32xbf16>, vector<32x128xbf16>, vector<8x128xf32> -> vector<8x128xf32>
    %276 = arith.truncf %271 : vector<8x32xf32> to vector<8x32xbf16>
    %c1_111 = arith.constant 1 : index
    %c0_112 = arith.constant 0 : index
    %c0_113 = arith.constant 0 : index
    %277 = vector.load %arg12[%c1_111, %c0_112, %c0_113] : memref<2x32x128xbf16, #tpu.memory_space<vmem>>, vector<1x32x128xbf16>
    %278 = vector.shape_cast %277 : vector<1x32x128xbf16> to vector<32x128xbf16>
    %cst_114 = arith.constant dense<0.000000e+00> : vector<8x128xf32>
    %279 = tpu.matmul %276, %278, %cst_114 {dimension_numbers = #tpu.dot_dimension_numbers<[1], [0], [0], [1], [0, 0, 1, 1], [], []>} : vector<8x32xbf16>, vector<32x128xbf16>, vector<8x128xf32> -> vector<8x128xf32>
    %280 = arith.addf %275, %279 : vector<8x128xf32>
    %281 = vector.extract_strided_slice %280 {offsets = [0, 0], sizes = [8, 32], strides = [1, 1]} : vector<8x128xf32> to vector<8x32xf32>
    %282 = vector.extract_strided_slice %280 {offsets = [0, 32], sizes = [8, 32], strides = [1, 1]} : vector<8x128xf32> to vector<8x32xf32>
    %283 = vector.extract_strided_slice %280 {offsets = [0, 64], sizes = [8, 32], strides = [1, 1]} : vector<8x128xf32> to vector<8x32xf32>
    %284 = vector.extract_strided_slice %280 {offsets = [0, 96], sizes = [8, 32], strides = [1, 1]} : vector<8x128xf32> to vector<8x32xf32>
    %285 = arith.negf %284 : vector<8x32xf32>
    %286 = math.exp %285 : vector<8x32xf32>
    %cst_115 = arith.constant 1.000000e+00 : f32
    %287 = vector.broadcast %cst_115 : f32 to vector<8x32xf32>
    %288 = arith.addf %287, %286 : vector<8x32xf32>
    %289 = arith.divf %287, %288 : vector<8x32xf32>
    %290 = arith.mulf %284, %289 : vector<8x32xf32>
    %c1_116 = arith.constant 1 : index
    %c0_117 = arith.constant 0 : index
    %c0_118 = arith.constant 0 : index
    %291 = vector.load %arg14[%c1_116, %c0_117, %c0_118] : memref<2x1x32xf32, #tpu.memory_space<vmem>>, vector<1x1x32xf32>
    %292 = vector.shape_cast %291 : vector<1x1x32xf32> to vector<1x32xf32>
    %c1_119 = arith.constant 1 : index
    %c0_120 = arith.constant 0 : index
    %c0_121 = arith.constant 0 : index
    %293 = vector.load %arg15[%c1_119, %c0_120, %c0_121] : memref<2x1x32xf32, #tpu.memory_space<vmem>>, vector<1x1x32xf32>
    %294 = vector.shape_cast %293 : vector<1x1x32xf32> to vector<1x32xf32>
    %cst_122 = arith.constant 0.000000e+00 : f32
    %295 = vector.broadcast %cst_122 : f32 to vector<8x1xf32>
    %296 = arith.subf %295, %41 : vector<8x1xf32>
    %297 = vector.broadcast %296 : vector<8x1xf32> to vector<8x32xf32>
    %298 = vector.broadcast %292 : vector<1x32xf32> to vector<8x32xf32>
    %299 = arith.mulf %297, %298 : vector<8x32xf32>
    %300 = math.exp %299 : vector<8x32xf32>
    %301 = arith.mulf %283, %300 : vector<8x32xf32>
    %cst_123 = arith.constant 1.000000e+00 : f32
    %302 = vector.broadcast %cst_123 : f32 to vector<8x1xf32>
    %303 = arith.addf %41, %302 : vector<8x1xf32>
    %304 = vector.broadcast %303 : vector<8x1xf32> to vector<8x32xf32>
    %305 = vector.broadcast %292 : vector<1x32xf32> to vector<8x32xf32>
    %306 = arith.mulf %304, %305 : vector<8x32xf32>
    %307 = math.exp %306 : vector<8x32xf32>
    %308 = arith.mulf %281, %307 : vector<8x32xf32>
    %309 = tpu.concatenate %308, %308, %308, %308 in 0 : vector<8x32xf32>, vector<8x32xf32>, vector<8x32xf32>, vector<8x32xf32> -> vector<32x32xf32>
    %310 = arith.mulf %309, %9 : vector<32x32xf32>
    %311 = tpu.concatenate %282, %282, %282, %282 in 0 : vector<8x32xf32>, vector<8x32xf32>, vector<8x32xf32>, vector<8x32xf32> -> vector<32x32xf32>
    %312 = arith.mulf %311, %9 : vector<32x32xf32>
    %cst_124 = arith.constant dense<0.000000e+00> : vector<8x32xf32>
    %313 = tpu.matmul %301, %310, %cst_124 {dimension_numbers = #tpu.dot_dimension_numbers<[1], [1], [0], [0], [0, 0, 1, 0], [], []>} : vector<8x32xf32>, vector<32x32xf32>, vector<8x32xf32> -> vector<8x32xf32>
    %314 = vector.broadcast %294 : vector<1x32xf32> to vector<8x32xf32>
    %315 = arith.mulf %283, %314 : vector<8x32xf32>
    %316 = arith.mulf %315, %281 : vector<8x32xf32>
    %cst_125 = arith.constant dense<0.000000e+00> : vector<8x32xf32>
    %317 = tpu.matmul %316, %18, %cst_125 {dimension_numbers = #tpu.dot_dimension_numbers<[1], [0], [0], [1], [0, 0, 1, 1], [], []>} : vector<8x32xf32>, vector<32x32xf32>, vector<8x32xf32> -> vector<8x32xf32>
    %318 = arith.mulf %25, %313 : vector<8x32xf32>
    %319 = arith.mulf %28, %317 : vector<8x32xf32>
    %320 = arith.addf %318, %319 : vector<8x32xf32>
    %cst_126 = arith.constant dense<0.000000e+00> : vector<8x32xf32>
    %321 = tpu.matmul %320, %312, %cst_126 {dimension_numbers = #tpu.dot_dimension_numbers<[1], [0], [0], [1], [0, 0, 1, 1], [], []>} : vector<8x32xf32>, vector<32x32xf32>, vector<8x32xf32> -> vector<8x32xf32>
    %cst_127 = arith.constant 1.250000e-01 : f32
    %322 = vector.broadcast %cst_127 : f32 to vector<8x32xf32>
    %323 = arith.mulf %321, %322 : vector<8x32xf32>
    %324 = arith.mulf %323, %323 : vector<8x32xf32>
    %325 = tpu.concatenate %323, %324 in 0 : vector<8x32xf32>, vector<8x32xf32> -> vector<16x32xf32>
    %cst_128 = arith.constant dense<0.000000e+00> : vector<16x32xf32>
    %326 = tpu.matmul %325, %39, %cst_128 {dimension_numbers = #tpu.dot_dimension_numbers<[1], [0], [0], [1], [0, 0, 1, 1], [], []>} : vector<16x32xf32>, vector<32x32xf32>, vector<16x32xf32> -> vector<16x32xf32>
    %327 = vector.extract_strided_slice %326 {offsets = [0, 0], sizes = [8, 32], strides = [1, 1]} : vector<16x32xf32> to vector<8x32xf32>
    %328 = vector.extract_strided_slice %326 {offsets = [8, 0], sizes = [8, 32], strides = [1, 1]} : vector<16x32xf32> to vector<8x32xf32>
    %329 = arith.mulf %327, %327 : vector<8x32xf32>
    %330 = arith.subf %328, %329 : vector<8x32xf32>
    %331 = arith.subf %323, %327 : vector<8x32xf32>
    %cst_129 = arith.constant 9.99999974E-6 : f32
    %332 = vector.broadcast %cst_129 : f32 to vector<8x32xf32>
    %333 = arith.addf %330, %332 : vector<8x32xf32>
    %334 = math.rsqrt %333 : vector<8x32xf32>
    %335 = arith.mulf %331, %334 : vector<8x32xf32>
    %c1_130 = arith.constant 1 : index
    %c0_131 = arith.constant 0 : index
    %c0_132 = arith.constant 0 : index
    %336 = vector.load %arg16[%c1_130, %c0_131, %c0_132] : memref<2x1x32xf32, #tpu.memory_space<vmem>>, vector<1x1x32xf32>
    %337 = vector.shape_cast %336 : vector<1x1x32xf32> to vector<1x32xf32>
    %338 = vector.broadcast %337 : vector<1x32xf32> to vector<8x32xf32>
    %339 = arith.mulf %335, %338 : vector<8x32xf32>
    %c1_133 = arith.constant 1 : index
    %c0_134 = arith.constant 0 : index
    %c0_135 = arith.constant 0 : index
    %340 = vector.load %arg17[%c1_133, %c0_134, %c0_135] : memref<2x1x32xf32, #tpu.memory_space<vmem>>, vector<1x1x32xf32>
    %341 = vector.shape_cast %340 : vector<1x1x32xf32> to vector<1x32xf32>
    %342 = vector.broadcast %341 : vector<1x32xf32> to vector<8x32xf32>
    %343 = arith.addf %339, %342 : vector<8x32xf32>
    %344 = arith.mulf %343, %290 : vector<8x32xf32>
    %345 = arith.truncf %344 : vector<8x32xf32> to vector<8x32xbf16>
    %c1_136 = arith.constant 1 : index
    %c0_137 = arith.constant 0 : index
    %c0_138 = arith.constant 0 : index
    %346 = vector.load %arg13[%c1_136, %c0_137, %c0_138] : memref<2x32x32xbf16, #tpu.memory_space<vmem>>, vector<1x32x32xbf16>
    %347 = vector.shape_cast %346 : vector<1x32x32xbf16> to vector<32x32xbf16>
    %cst_139 = arith.constant dense<0.000000e+00> : vector<8x32xf32>
    %348 = tpu.matmul %345, %347, %cst_139 {dimension_numbers = #tpu.dot_dimension_numbers<[1], [0], [0], [1], [0, 0, 1, 1], [], []>} : vector<8x32xbf16>, vector<32x32xbf16>, vector<8x32xf32> -> vector<8x32xf32>
    %349 = arith.addf %348, %242 : vector<8x32xf32>
    %c1_140 = arith.constant 1 : index
    %c0_141 = arith.constant 0 : index
    %c0_142 = arith.constant 0 : index
    %350 = vector.load %arg9[%c1_140, %c0_141, %c0_142] : memref<2x1x32xf32, #tpu.memory_space<vmem>>, vector<1x1x32xf32>
    %351 = vector.shape_cast %350 : vector<1x1x32xf32> to vector<1x32xf32>
    %c1_143 = arith.constant 1 : index
    %c0_144 = arith.constant 0 : index
    %c0_145 = arith.constant 0 : index
    %352 = vector.load %arg10[%c1_143, %c0_144, %c0_145] : memref<2x1x32xf32, #tpu.memory_space<vmem>>, vector<1x1x32xf32>
    %353 = vector.shape_cast %352 : vector<1x1x32xf32> to vector<1x32xf32>
    %cst_146 = arith.constant dense<0.000000e+00> : vector<8xf32>
    %354 = vector.multi_reduction <add>, %349, %cst_146 [1] : vector<8x32xf32> to vector<8xf32>
    %355 = vector.shape_cast %354 : vector<8xf32> to vector<8x1xf32>
    %cst_147 = arith.constant 3.200000e+01 : f32
    %356 = vector.broadcast %cst_147 : f32 to vector<8x1xf32>
    %357 = arith.divf %355, %356 : vector<8x1xf32>
    %358 = vector.broadcast %357 : vector<8x1xf32> to vector<8x32xf32>
    %359 = arith.subf %349, %358 : vector<8x32xf32>
    %360 = arith.mulf %359, %359 : vector<8x32xf32>
    %cst_148 = arith.constant dense<0.000000e+00> : vector<8xf32>
    %361 = vector.multi_reduction <add>, %360, %cst_148 [1] : vector<8x32xf32> to vector<8xf32>
    %362 = vector.shape_cast %361 : vector<8xf32> to vector<8x1xf32>
    %cst_149 = arith.constant 3.200000e+01 : f32
    %363 = vector.broadcast %cst_149 : f32 to vector<8x1xf32>
    %364 = arith.divf %362, %363 : vector<8x1xf32>
    %365 = vector.broadcast %357 : vector<8x1xf32> to vector<8x32xf32>
    %366 = arith.subf %349, %365 : vector<8x32xf32>
    %cst_150 = arith.constant 9.99999974E-6 : f32
    %367 = vector.broadcast %cst_150 : f32 to vector<8x1xf32>
    %368 = arith.addf %364, %367 : vector<8x1xf32>
    %369 = math.rsqrt %368 : vector<8x1xf32>
    %370 = vector.broadcast %369 : vector<8x1xf32> to vector<8x32xf32>
    %371 = arith.mulf %366, %370 : vector<8x32xf32>
    %372 = vector.broadcast %351 : vector<1x32xf32> to vector<8x32xf32>
    %373 = arith.mulf %371, %372 : vector<8x32xf32>
    %374 = vector.broadcast %353 : vector<1x32xf32> to vector<8x32xf32>
    %375 = arith.addf %373, %374 : vector<8x32xf32>
    %c1_i32_151 = arith.constant 1 : i32
    %376 = tpu.dynamic_rotate %375 by %c1_i32_151 dim 0 : vector<8x32xf32>, i32 -> vector<8x32xf32>
    %377 = vector.broadcast %0 : vector<8x1xf32> to vector<8x32xf32>
    %378 = arith.mulf %376, %377 : vector<8x32xf32>
    %379 = arith.truncf %375 : vector<8x32xf32> to vector<8x32xbf16>
    %c1_152 = arith.constant 1 : index
    %c0_153 = arith.constant 0 : index
    %c0_154 = arith.constant 0 : index
    %380 = vector.load %arg18[%c1_152, %c0_153, %c0_154] : memref<2x32x160xbf16, #tpu.memory_space<vmem>>, vector<1x32x160xbf16>
    %381 = vector.shape_cast %380 : vector<1x32x160xbf16> to vector<32x160xbf16>
    %cst_155 = arith.constant dense<0.000000e+00> : vector<8x160xf32>
    %382 = tpu.matmul %379, %381, %cst_155 {dimension_numbers = #tpu.dot_dimension_numbers<[1], [0], [0], [1], [0, 0, 1, 1], [], []>} : vector<8x32xbf16>, vector<32x160xbf16>, vector<8x160xf32> -> vector<8x160xf32>
    %383 = arith.truncf %378 : vector<8x32xf32> to vector<8x32xbf16>
    %c1_156 = arith.constant 1 : index
    %c0_157 = arith.constant 0 : index
    %c0_158 = arith.constant 0 : index
    %384 = vector.load %arg19[%c1_156, %c0_157, %c0_158] : memref<2x32x160xbf16, #tpu.memory_space<vmem>>, vector<1x32x160xbf16>
    %385 = vector.shape_cast %384 : vector<1x32x160xbf16> to vector<32x160xbf16>
    %cst_159 = arith.constant dense<0.000000e+00> : vector<8x160xf32>
    %386 = tpu.matmul %383, %385, %cst_159 {dimension_numbers = #tpu.dot_dimension_numbers<[1], [0], [0], [1], [0, 0, 1, 1], [], []>} : vector<8x32xbf16>, vector<32x160xbf16>, vector<8x160xf32> -> vector<8x160xf32>
    %387 = arith.addf %382, %386 : vector<8x160xf32>
    %c1_160 = arith.constant 1 : index
    %c0_161 = arith.constant 0 : index
    %c0_162 = arith.constant 0 : index
    %388 = vector.load %arg20[%c1_160, %c0_161, %c0_162] : memref<2x1x160xf32, #tpu.memory_space<vmem>>, vector<1x1x160xf32>
    %389 = vector.shape_cast %388 : vector<1x1x160xf32> to vector<1x160xf32>
    %390 = vector.broadcast %389 : vector<1x160xf32> to vector<8x160xf32>
    %391 = arith.addf %387, %390 : vector<8x160xf32>
    %392 = vector.extract_strided_slice %391 {offsets = [0, 0], sizes = [8, 128], strides = [1, 1]} : vector<8x160xf32> to vector<8x128xf32>
    %393 = vector.extract_strided_slice %391 {offsets = [0, 128], sizes = [8, 32], strides = [1, 1]} : vector<8x160xf32> to vector<8x32xf32>
    %cst_163 = arith.constant 0.000000e+00 : f32
    %394 = vector.broadcast %cst_163 : f32 to vector<8x128xf32>
    %395 = arith.maximumf %392, %394 : vector<8x128xf32>
    %396 = arith.mulf %395, %395 : vector<8x128xf32>
    %397 = arith.truncf %396 : vector<8x128xf32> to vector<8x128xbf16>
    %c1_164 = arith.constant 1 : index
    %c0_165 = arith.constant 0 : index
    %c0_166 = arith.constant 0 : index
    %398 = vector.load %arg21[%c1_164, %c0_165, %c0_166] : memref<2x128x32xbf16, #tpu.memory_space<vmem>>, vector<1x128x32xbf16>
    %399 = vector.shape_cast %398 : vector<1x128x32xbf16> to vector<128x32xbf16>
    %cst_167 = arith.constant dense<0.000000e+00> : vector<8x32xf32>
    %400 = tpu.matmul %397, %399, %cst_167 {dimension_numbers = #tpu.dot_dimension_numbers<[1], [0], [0], [1], [0, 0, 1, 1], [], []>} : vector<8x128xbf16>, vector<128x32xbf16>, vector<8x32xf32> -> vector<8x32xf32>
    %c1_168 = arith.constant 1 : index
    %c0_169 = arith.constant 0 : index
    %c0_170 = arith.constant 0 : index
    %401 = vector.load %arg22[%c1_168, %c0_169, %c0_170] : memref<2x1x32xf32, #tpu.memory_space<vmem>>, vector<1x1x32xf32>
    %402 = vector.shape_cast %401 : vector<1x1x32xf32> to vector<1x32xf32>
    %403 = vector.broadcast %402 : vector<1x32xf32> to vector<8x32xf32>
    %404 = arith.addf %400, %403 : vector<8x32xf32>
    %405 = arith.negf %393 : vector<8x32xf32>
    %406 = math.exp %405 : vector<8x32xf32>
    %cst_171 = arith.constant 1.000000e+00 : f32
    %407 = vector.broadcast %cst_171 : f32 to vector<8x32xf32>
    %408 = arith.addf %407, %406 : vector<8x32xf32>
    %409 = arith.divf %407, %408 : vector<8x32xf32>
    %410 = arith.mulf %409, %404 : vector<8x32xf32>
    %411 = arith.addf %349, %410 : vector<8x32xf32>
    %c0_172 = arith.constant 0 : index
    %c0_173 = arith.constant 0 : index
    %412 = vector.load %arg5[%c0_172, %c0_173] : memref<1x32xf32, #tpu.memory_space<vmem>>, vector<1x32xf32>
    %c0_174 = arith.constant 0 : index
    %c0_175 = arith.constant 0 : index
    %413 = vector.load %arg6[%c0_174, %c0_175] : memref<1x32xf32, #tpu.memory_space<vmem>>, vector<1x32xf32>
    %cst_176 = arith.constant dense<0.000000e+00> : vector<8xf32>
    %414 = vector.multi_reduction <add>, %411, %cst_176 [1] : vector<8x32xf32> to vector<8xf32>
    %415 = vector.shape_cast %414 : vector<8xf32> to vector<8x1xf32>
    %cst_177 = arith.constant 3.200000e+01 : f32
    %416 = vector.broadcast %cst_177 : f32 to vector<8x1xf32>
    %417 = arith.divf %415, %416 : vector<8x1xf32>
    %418 = vector.broadcast %417 : vector<8x1xf32> to vector<8x32xf32>
    %419 = arith.subf %411, %418 : vector<8x32xf32>
    %420 = arith.mulf %419, %419 : vector<8x32xf32>
    %cst_178 = arith.constant dense<0.000000e+00> : vector<8xf32>
    %421 = vector.multi_reduction <add>, %420, %cst_178 [1] : vector<8x32xf32> to vector<8xf32>
    %422 = vector.shape_cast %421 : vector<8xf32> to vector<8x1xf32>
    %cst_179 = arith.constant 3.200000e+01 : f32
    %423 = vector.broadcast %cst_179 : f32 to vector<8x1xf32>
    %424 = arith.divf %422, %423 : vector<8x1xf32>
    %425 = vector.broadcast %417 : vector<8x1xf32> to vector<8x32xf32>
    %426 = arith.subf %411, %425 : vector<8x32xf32>
    %cst_180 = arith.constant 9.99999974E-6 : f32
    %427 = vector.broadcast %cst_180 : f32 to vector<8x1xf32>
    %428 = arith.addf %424, %427 : vector<8x1xf32>
    %429 = math.rsqrt %428 : vector<8x1xf32>
    %430 = vector.broadcast %429 : vector<8x1xf32> to vector<8x32xf32>
    %431 = arith.mulf %426, %430 : vector<8x32xf32>
    %432 = vector.broadcast %412 : vector<1x32xf32> to vector<8x32xf32>
    %433 = arith.mulf %431, %432 : vector<8x32xf32>
    %434 = vector.broadcast %413 : vector<1x32xf32> to vector<8x32xf32>
    %435 = arith.addf %433, %434 : vector<8x32xf32>
    %c0_181 = arith.constant 0 : index
    %c0_182 = arith.constant 0 : index
    %436 = vector.load %arg23[%c0_181, %c0_182] : memref<8x32xf32, #tpu.memory_space<vmem>>, vector<8x32xf32>
    tpu.vector_store %arg23[%c0_181, %c0_182], %435 {strides = array<i32>} : memref<8x32xf32, #tpu.memory_space<vmem>>, vector<8x32xf32>,
    return
  }
}

</mosaic_0001>

<bundles_post_ra>
// kernel: rwkv5_forward.1
= control target key start
LH: loop header
LB: loop body
LE: loop exit
PB: predicated region body
PF: predicated region fallthrough
CT: control target
= control target key end

     0   :  { %s3654_s0 = inlined_call_operand.vmem [shape: s32[8,1], index: 0, kind: input, shape index: {}]   ;;  %s3655_s1 = inlined_call_operand.vmem [shape: f32[8,1], index: 1, kind: input, shape index: {}]   ;;  %s3656_s2 = inlined_call_operand.vmem [shape: f32[64,32], index: 2, kind: input, shape index: {}]   ;;  %s3657_s3 = inlined_call_operand.vmem [shape: f32[1,32], index: 3, kind: input, shape index: {}]   ;;  %s3658_s4 = inlined_call_operand.vmem [shape: f32[1,32], index: 4, kind: input, shape index: {}]   ;;  %s3659_s5 = inlined_call_operand.vmem [shape: f32[1,32], index: 5, kind: input, shape index: {}]   ;;  %s3660_s6 = inlined_call_operand.vmem [shape: f32[1,32], index: 6, kind: input, shape index: {}]   ;;  %s3661_s7 = inlined_call_operand.vmem [shape: f32[2,1,32], index: 7, kind: input, shape index: {}]   ;;  %s3662_s8 = inlined_call_operand.vmem [shape: f32[2,1,32], index: 8, kind: input, shape index: {}]   ;;  %s3663_s9 = inlined_call_operand.vmem [shape: f32[2,1,32], index: 9, kind: input, shape index: {}]   ;;  %s3664_s10 = inlined_call_operand.vmem [shape: f32[2,1,32], index: 10, kind: input, shape index: {}]   ;;  %s3665_s11 = inlined_call_operand.vmem [shape: bf16[2,32,128], index: 11, kind: input, shape index: {}]   ;;  %s3666_s12 = inlined_call_operand.vmem [shape: bf16[2,32,128], index: 12, kind: input, shape index: {}]   ;;  %s3667_s13 = inlined_call_operand.vmem [shape: bf16[2,32,32], index: 13, kind: input, shape index: {}]   ;;  %s3668_s14 = inlined_call_operand.hbm [shape: f32[2,1,32], index: 14, kind: input, shape index: {}]   ;;  %s3669_s15 = inlined_call_operand.vmem [shape: f32[2,1,32], index: 15, kind: input, shape index: {}]   ;;  %s3670_s16 = inlined_call_operand.vmem [shape: f32[2,1,32], index: 16, kind: input, shape index: {}]   ;;  %s3671_s17 = inlined_call_operand.hbm [shape: f32[2,1,32], index: 17, kind: input, shape index: {}]   ;;  %s3672_s18 = inlined_call_operand.vmem [shape: bf16[2,32,160], index: 18, kind: input, shape index: {}]   ;;  %s3673_s19 = inlined_call_operand.vmem [shape: bf16[2,32,160], index: 19, kind: input, shape index: {}]   ;;  %s3674_s20 = inlined_call_operand.vmem [shape: f32[2,1,160], index: 20, kind: input, shape index: {}]   ;;  %s3675_s21 = inlined_call_operand.vmem [shape: bf16[2,128,32], index: 21, kind: input, shape index: {}]   ;;  %s3676_s22 = inlined_call_operand.vmem [shape: f32[2,1,32], index: 22, kind: input, shape index: {}]   ;;  %s3677_s23 = inlined_call_operand.hbm [shape: f32[8,32], index: 23, kind: output, shape index: {}]  }
   0x1   :  { %3680 = sst [smem:[#allocation11_spill]] %s3654_s0 }
   0x2   :  { %3681 = sst [smem:[#allocation12_spill]] %s3655_s1 }
   0x3   :  { %3682 = sst [smem:[#allocation13_spill]] %s3656_s2 }
   0x4   :  { %3683 = sst [smem:[#allocation14_spill]] %s3657_s3 }
   0x5   :  { %3684 = sst [smem:[#allocation15_spill]] %s3658_s4 }
   0x6   :  { %3685 = sst [smem:[#allocation16_spill]] %s3659_s5 }
   0x7   :  { %3686 = sst [smem:[#allocation17_spill]] %s3660_s6 }
   0x8   :  { %3687 = sst [smem:[#allocation18_spill]] %s3661_s7 }
   0x9   :  { %28 = vsyncpa [#allocation3], 0 }
   0xa   :  { %29 = vsyncpa [#allocation6], 0 }
   0xb   :  { %30 = vsyncpa [#allocation4], 0  ;;  %s2929_s4 = smov [#allocation2]   ;;  %s2857_s5 = scalar_lea.hbm %s3668_s14, 32 }
   0xc   :  { %s64_s30 = sshll.u32 %s2929_s4, 4  ;;  %p2858_p0 = scmp.ne.s32.totalorder %s3668_s14, %s2857_s5  ;;  %s65_s30 = int_to_ptr.vmem [resolvable:$true] %s64_s30 }
   0xd   :  { %p2861_p1 = scmp.lt.u32.totalorder %s2857_s5, %s3668_s14 }
   0xf   :  { %p2863_p2 = pnand %p2861_p1, %p2858_p0 }
  0x11   :  { %2866 = shalt.err (!%p2863_p2)
}
  0x12   :  { %s2867_s27 = scalar_lea.vmem %s65_s30, 32  ;;  %p2872_p4 = scmp.lt.s32.totalorder %s65_s30, %s65_s30 }
  0x13   :  { %p2868_p3 = scmp.ne.s32.totalorder %s65_s30, %s2867_s27  ;;  %p2873_p5 = scmp.lt.s32.totalorder %s2867_s27, %s2867_s27 }
  0x15   :  { %p2874_p6 = por %p2873_p5, %p2872_p4 }
  0x17   :  { %p2875_p7 = pnand %p2874_p6, %p2868_p3 }
  0x19   :  { %2878 = shalt.err (!%p2875_p7)
}
  0x1a   :  { %s2930_s7 = smov 16   ;;  %s2931_s28 = smov 1  }
  0x1b   :  { %70 = dma.hbm_to_vmem [thread:$0]  %s3668_s14, 32, %s65_s30, [#allocation3], %s2930_s7, %s2930_s7, %s2931_s28  }
  0x1c   :  { %s2932_s0 = smov [#allocation5]   ;;  %s2879_s5 = scalar_lea.hbm %s3671_s17, 32 }
  0x1d   :  { %s80_s4 = sshll.u32 %s2932_s0, 4  ;;  %p2880_p8 = scmp.ne.s32.totalorder %s3671_s17, %s2879_s5  ;;  %s81_s4 = int_to_ptr.vmem [resolvable:$true] %s80_s4 }
  0x1e   :  { %p2883_p9 = scmp.lt.u32.totalorder %s2879_s5, %s3671_s17 }
  0x20   :  { %p2885_p10 = pnand %p2883_p9, %p2880_p8 }
  0x22   :  { %2888 = shalt.err (!%p2885_p10)
}
  0x23   :  { %s2889_s27 = scalar_lea.vmem %s81_s4, 32  ;;  %p2894_p12 = scmp.lt.s32.totalorder %s81_s4, %s81_s4 }
  0x24   :  { %p2890_p11 = scmp.ne.s32.totalorder %s81_s4, %s2889_s27  ;;  %p2895_p13 = scmp.lt.s32.totalorder %s2889_s27, %s2889_s27 }
  0x26   :  { %p2896_p0 = por %p2895_p13, %p2894_p12 }
  0x28   :  { %p2897_p1 = pnand %p2896_p0, %p2890_p11 }
  0x2a   :  { %2900 = shalt.err (!%p2897_p1)
}
  0x2b   :  { %86 = dma.hbm_to_vmem [thread:$0]  %s3671_s17, 32, %s81_s4, [#allocation6], %s2930_s7, %s2930_s7, %s2931_s28  }
  0x2c   :  { %2923 = dma.done.wait [#allocation3], 32  }
  0x2d   :  { %2924 = vsyncadd [#allocation3], 4294967264 }
  0x2e   :  { %2925 = dma.done.wait [#allocation6], 32  }
  0x2f   :  { %2926 = vsyncadd [#allocation6], 4294967264  ;;  %v2933_v0 = vmov 0   ;;  %v2934_v1 = vmov 0.0|0.0   ;;  %s3688_s0 = sld [smem:[#allocation11_spill]]  ;;  %s3689_s7 = sld [smem:[#allocation13_spill]]  ;;  %v105_v16 = vlaneseq }
  0x30   :  { %2733 = vset.pattern.permute.xlu0 %v2933_v0  ;;  %2644 = vmatprep.subr.bf16.mxu1 %v2934_v1  ;;  %vm2935_vm0 = vmmov 0   ;;  %v2936_v10 = vmov 0.0   ;;  %vm156_vm1 = vcmask 523264   ;;  %vm232_vm3 = vcmask 261120   ;;  %s3691_s25 = sld [smem:[#allocation15_spill]]  ;;  %s3692_s26 = sld [smem:[#allocation12_spill]] }
  0x31   :  { %2734 = vset.pattern.permute.xlu1 %v2933_v0  ;;  %2656 = vmatprep.subr.bf16.mxu0 %v2934_v1  ;;  %v3125_v17 = vand.u32 127, %v105_v16  ;;  %v2765_v44 = vld [vmem:[%s3666_s12] sm:$0xff]   ;;  %v2766_v45 = vld [vmem:[%s3666_s12 + $0x8] sm:$0xff]   ;;  %v3156_v46 = vshrl.u32 %v105_v16, 7  ;;  %s2937_s3 = smov 64   ;;  %s3693_s17 = sld [smem:[#allocation18_spill]]  ;;  %vm3245_vm10 = vmpackc.low %vm232_vm3, %vm232_vm3 }
  0x32   :  { %2465 = vmatprep.mubr.msk.f32.mxu1 %vm2935_vm0, %v2936_v10  ;;  %2492 = vmatprep.mubr.msk.f32.mxu0 %vm2935_vm0, %v2936_v10  ;;  %v2229_v47 = vld [vmem:[%s3669_s15] ss:$0 sm:$0xff]  ;;  %s2940_s2 = smov 96   ;;  %s3704_s27 = sld [smem:[#allocation16_spill]] }
  0x33   :  { %v140_v48 = vcvt.s32.f32 %v3156_v46  ;;  %v2223_v49 = vld [vmem:[#allocation2] ss:$0 sm:$0xff]  ;;  %v116_v16 = vshra.s32 %v3125_v17, 3  ;;  %s3705_s29 = sld [smem:[#allocation17_spill]] }
  0x34   :  { %v2215_v60 = vld [vmem:[%s3662_s8] ss:$0 sm:$0xff] }
  0x35   :  { %v141_v2 = vld [vmem:[%s3688_s0] sm:$0xff]  ;;  %v149_v4 = vld [vmem:[%s3689_s7 + $0x8] sm:$0xff]  ;;  %v150_v6 = vld [vmem:[%s3689_s7 + $0x10] sm:$0xff]  ;;  %v3163_v50 = vsub.f32 0.0, %v140_v48 }
  0x36   :  { %v148_v3 = vld [vmem:[%s3689_s7] sm:$0xff]  ;;  %143 = vperm.xlu0 %2733, %v141_v2   ;;  %v151_v7 = vld [vmem:[%s3689_s7 + $0x18] sm:$0xff]  ;;  %v153_v9 = vld [vmem:[%s3689_s7 + $0x28] sm:$0xff] }
  0x37   :  { %v2645_v5 = vpack.c.bf16 %v149_v4, %v148_v3  ;;  %v152_v8 = vld [vmem:[%s3689_s7 + $0x20] sm:$0xff]  ;;  %v2648_v11 = vpack.c.bf16 %v151_v7, %v150_v6  ;;  %v154_v12 = vld [vmem:[%s3689_s7 + $0x30] sm:$0xff]  ;;  %v155_v13 = vld [vmem:[%s3689_s7 + $0x38] sm:$0xff]  ;;  %s3690_s7 = sld [smem:[#allocation14_spill]]  ;;  %v433_v51 = vmul.f32 %v2223_v49, %v3163_v50 }
  0x38   :  { %v2651_v14 = vpack.c.bf16 %v153_v9, %v152_v8  ;;  %v2654_v15 = vpack.c.bf16 %v155_v13, %v154_v12  ;;  %v2213_v34 = vld [vmem:[%s3691_s25] ss:$0 sm:$0xff]  ;;  %v2768_v6 = vld [vmem:[%s3665_s11 + $0x8] sm:$0xff]   ;;  %v3190_v8 = vadd.f32 1.0, %v140_v48  ;;  %v107_v12 = vadd.s32 8, %v3156_v46 }
  0x39   :  { %2646 = vmatpush3.bf16.msra.mxu1 %v2645_v5  ;;  %v104_v43 = vld [vmem:[%s3692_s26] sm:$0xff]  ;;  %v434_v52 = vmul.f32 1.442695, %v433_v51  ;;  %s2939_s26 = smov 32  }
  0x3a   :  { %2647 = vmatprep.subr.bf16.mxu1 %v2934_v1  ;;  %v2214_v58 = vld [vmem:[%s3693_s17] ss:$0 sm:$0xff]  ;;  %v442_v9 = vmul.f32 %v2223_v49, %v3190_v8 }
  0x3b   :  { %v2767_v4 = vld [vmem:[%s3665_s11] sm:$0xff]  }
  0x3d   :  { %2649 = vmatpush3.bf16.msra.mxu1 %v2648_v11  ;;  %v2212_v32 = vld [vmem:[%s3690_s7] ss:$0 sm:$0xff]  ;;  %v443_v11 = vmul.f32 1.442695, %v442_v9 }
  0x3e   :  { %2650 = vmatprep.subr.bf16.mxu1 %v2934_v1 }
  0x41   :  { %2652 = vmatpush3.bf16.msra.mxu1 %v2651_v14  ;;  %v108_v14 = vadd.s32 16, %v3156_v46 }
  0x42   :  { %2653 = vmatprep.subr.bf16.mxu1 %v2934_v1 }
  0x45   :  { %2655 = vmatpush3.bf16.msra.mxu1 %v2654_v15  ;;  %v109_v15 = vadd.s32 24, %v3156_v46 }
  0x46   :  { %2468 = vmatprep.subr.bf16.mxu1 %v2936_v10 }
  0xb5   :  { %v144_v18 = vpop.permute.xlu0 %143 }
  0xb6   :  { %vm145_vm2 = vcmp.eq.s32.totalorder %v144_v18, %v3125_v17  ;;  %v112_v18 = vshra.s32 %v3156_v46, 3 }
  0xb7   :  { %v2210_v19 = vsel %vm145_vm2, 1.0, %v2936_v10 }
  0xb8   :  { %2466 = vmatmul.mubr.msk.f32.vlgmr.msra.gmra.mrb[0].mxu1 %vm156_vm1, %v2210_v19  ;;  %v113_v19 = vshra.s32 %v107_v12, 3  ;;  %vm3198_vm4 = vcmp.eq.s32.totalorder %v112_v18, %v116_v16 }
  0xb9   :  { %2472 = vmatprep.mubr.msk.bf16.mxu1 %vm2935_vm0, %v2936_v10  ;;  %2469 = vmatpush3.bf16.msra.mxu1 %v2765_v44 }
  0xba   :  { %2470 = vmatprep.subr.bf16.mxu1 %v2936_v10  ;;  %vm3202_vm5 = vcmp.eq.s32.totalorder %v113_v19, %v116_v16 }
  0xbb   :  { %vm2665_vm6 = vmpackc.low %vm3202_vm5, %vm3198_vm4 }
  0xbd   :  { %2471 = vmatpush3.bf16.msra.mxu1 %v2766_v45 }
  0xbe   :  { %2476 = vmatprep.subr.bf16.mxu1 %v2936_v10 }
 0x18b   :  { %v226_v20 = vpop.f32.mrb[0].mxu1 }
 0x18c   :  { %v2467_v21 = vpop.f32.mrb[1].mxu1  ;;  %v233_v22 = vsel %vm232_vm3, %v226_v20, 0.0 }
 0x18d   :  { %234 = vadd.xlane.f32.xlu0 %v233_v22  ;;  %v115_v21 = vshra.s32 %v109_v15, 3 }
 0x18f   :  { %vm3230_vm8 = vcmp.eq.s32.totalorder %v115_v21, %v116_v16 }
 0x21a   :  { %v235_v23 = vpop.xlane.xlu0 %234 }
 0x21b   :  { %v237_v24 = vmul.f32 0.03125, %v235_v23 }
 0x21d   :  { %v238_v25 = vsub.f32 %v226_v20, %v237_v24  ;;  %v114_v20 = vshra.s32 %v108_v14, 3 }
 0x21f   :  { %v239_v26 = vmul.f32 %v238_v25, %v238_v25  ;;  %vm3226_vm7 = vcmp.eq.s32.totalorder %v114_v20, %v116_v16 }
 0x220   :  { %vm2668_vm9 = vmpackc.low %vm3230_vm8, %vm3226_vm7 }
 0x221   :  { %v240_v27 = vsel %vm232_vm3, %v239_v26, 0.0  ;;  %v2938_v26 = vmov 1.0|1.0  }
 0x222   :  { %241 = vadd.xlane.f32.xlu1 %v240_v27 }
 0x2af   :  { %v242_v28 = vpop.xlane.xlu1 %241 }
 0x2b0   :  { %v243_v29 = vmul.f32 0.03125, %v242_v28  ;;  %v3219_v28 = vsel %vm3198_vm4, 1.0, %v2936_v10 }
 0x2b1   :  { %v136_v14 = vmul.f32 0.125, %v3219_v28 }
 0x2b2   :  { %v244_v30 = vadd.f32 1e-05, %v243_v29  ;;  %v3224_v29 = vsel %vm3202_vm5, 1.0, %v2936_v10 }
 0x2b3   :  { %v137_v15 = vmul.f32 0.125, %v3224_v29 }
 0x2b4   :  { %2817 = vrsqrt.f32 %v244_v30 }
 0x2b5   :  { %2819 = vpow2.f32 %v434_v52  ;;  %v3305_v16 = vpack.c.bf16 %v137_v15, %v136_v14 }
 0x2be   :  { %v2818_v31 = vpop.eup %2817 }
 0x2bf   :  { %v246_v33 = vmul.f32 %v2818_v31, %v238_v25  ;;  %v2820_v53 = vpop.eup %2819 }
 0x2c1   :  { %v253_v35 = vmul.f32 %v2212_v32, %v246_v33 }
 0x2c3   :  { %v3139_v36 = vadd.f32 %v2213_v34, %v253_v35 }
 0x2c5   :  { %v263_v37 = vsel %vm232_vm3, %v3139_v36, 0.0 }
 0x2c6   :  { %264 = vadd.xlane.f32.xlu1 %v263_v37 }
 0x353   :  { %v265_v38 = vpop.xlane.xlu1 %264 }
 0x354   :  { %v266_v39 = vmul.f32 0.03125, %v265_v38 }
 0x356   :  { %v267_v40 = vsub.f32 %v3139_v36, %v266_v39 }
 0x358   :  { %v268_v41 = vmul.f32 %v267_v40, %v267_v40 }
 0x35a   :  { %v269_v42 = vsel %vm232_vm3, %v268_v41, 0.0 }
 0x35b   :  { %270 = vadd.xlane.f32.xlu1 %v269_v42  ;;  %v3259_v42 = vsel %vm3226_vm7, 1.0, %v2936_v10 }
 0x36c   :  { %293 = vperm.xlu1 %2734, %v104_v43   ;;  %v3264_v43 = vsel %vm3230_vm8, 1.0, %v2936_v10 }
 0x370   :  { %562 = vrot.lane.b32.xlu1 %v2229_v47, %s2937_s3 }
 0x374   :  { %437 = vrot.lane.b32.xlu1 %v2820_v53, %s2937_s3  ;;  %v2735_v53 = vpack.i.bf16 %v3224_v29, %v3219_v28 }
 0x3e8   :  { %v271_v54 = vpop.xlane.xlu1 %270 }
 0x3e9   :  { %v272_v55 = vmul.f32 0.03125, %v271_v54  ;;  %v2740_v54 = vpack.i.bf16 %v3264_v43, %v3259_v42 }
 0x3eb   :  { %v273_v56 = vadd.f32 1e-05, %v272_v55 }
 0x3ec   :  { %v3173_v63 = vpop.permute.xlu1 %293 }
 0x3ed   :  { %2821 = vrsqrt.f32 %v273_v56 }
 0x3ee   :  { %2823 = vpow2.f32 %v443_v11 }
 0x3f0   :  { %v563_v13 = vpop.permute.xlu1 %562 }
 0x3f4   :  { %v438_v25 = vpop.permute.xlu1 %437 }
 0x3f7   :  { %v2822_v57 = vpop.eup %2821 }
 0x3f8   :  { %v275_v59 = vmul.f32 %v2822_v57, %v267_v40  ;;  %v2824_v24 = vpop.eup %2823 }
 0x3fa   :  { %v282_v61 = vmul.f32 %v2214_v58, %v275_v59 }
 0x3fc   :  { %v289_v62 = vadd.f32 %v2215_v60, %v282_v61 }
 0x3fe   :  { %v290_v2 = vrot.slane %v289_v62, 7  ;;  %v297_v7 = vpack.c.bf16 %v289_v62, %v289_v62 }
 0x400   :  { %v296_v3 = vmul.f32 %v3173_v63, %v290_v2 }
 0x402   :  { %v302_v5 = vpack.c.bf16 %v296_v3, %v296_v3 }
 0x404   :  { %2473 = vmatmul.mubr.msk.bf16.vlgmr.msra.gmra.mrb[4].mxu1 %vm232_vm3, %v302_v5 }
 0x405   :  { %2477 = vmatpush3.bf16.msra.mxu1 %v2767_v4  ;;  %2480 = vmatprep.mubr.msk.bf16.mxu1 %vm2935_vm0, %v2936_v10 }
 0x406   :  { %2478 = vmatprep.subr.bf16.mxu1 %v2936_v10 }
 0x409   :  { %2479 = vmatpush3.bf16.msra.mxu1 %v2768_v6 }
 0x40a   :  { %2664 = vmatprep.subr.bf16.mxu1 %v2934_v1 }
 0x410   :  { %2481 = vmatmul.mubr.msk.bf16.vlgmr.msra.gmra.mrb[4].mxu1 %vm232_vm3, %v297_v7 }
 0x411   :  { %2503 = vmatprep.mubr.msk.f32.mxu1 %vm2935_vm0, %v2936_v10  ;;  %2666 = vmatpush3.bf16.msk.msra.mxu1 %vm2665_vm6, %v2938_v26 }
 0x412   :  { %2667 = vmatprep.subr.bf16.mxu1 %v2934_v1 }
 0x415   :  { %2669 = vmatpush3.bf16.msk.msra.mxu1 %vm2668_vm9, %v2938_v26 }
 0x416   :  { %2670 = vmatprep.subr.bf16.mxu1 %v2934_v1 }
 0x4e3   :  { %v411_v27 = vpop.f32.mrb[4].mxu1 }
 0x4e4   :  { %v440_v32 = vmul.f32 %v438_v25, %v411_v27  ;;  %567 = vrot.lane.b32.xlu0 %v411_v27, %s2937_s3  ;;  %v2482_v33 = vpop.f32.mrb[5].mxu1  ;;  %v445_v34 = vmul.f32 %v2824_v24, %v411_v27  ;;  %v565_v48 = vmul.f32 %v563_v13, %v411_v27  ;;  %v2222_v55 = vmul.f32 -1.442695, %v411_v27 }
 0x4e5   :  { %v414_v35 = vpop.f32.mrb[6].mxu1 }
 0x4e6   :  { %v2483_v37 = vpop.f32.mrb[7].mxu1  ;;  %471 = vrot.lane.b32.xlu1 %v440_v32, %s2937_s3  ;;  %v446_v38 = vmul.f32 %v3219_v28, %v445_v34  ;;  %v447_v39 = vmul.f32 %v3224_v29, %v445_v34  ;;  %v448_v44 = vmul.f32 %v3259_v42, %v445_v34  ;;  %v449_v45 = vmul.f32 %v3264_v43, %v445_v34 }
 0x4e7   :  { %2825 = vpow2.f32 %v2222_v55  ;;  %v129_v35 = vand.u32 7, %v3125_v17  ;;  %v138_v17 = vmul.f32 0.125, %v3259_v42  ;;  %v2769_v55 = vld [vmem:[%s3667_s13] sm:$0xff]  }
 0x4e8   :  { %v2657_v41 = vpack.c.bf16 %v447_v39, %v446_v38  ;;  %v2661_v47 = vpack.c.bf16 %v449_v45, %v448_v44 }
 0x4e9   :  { %vm130_vm11 = vcmp.gt.s32.totalorder %v3156_v46, %v129_v35  ;;  %vm133_vm12 = vcmp.eq.s32.totalorder %v3156_v46, %v129_v35 }
 0x4ea   :  { %2659 = vmatpush3.bf16.xpose.msk.msra.mxu0 %vm3245_vm10, %v2657_v41  ;;  %v3315_v37 = vsel %vm130_vm11, 1.0, %v2936_v10  ;;  %v3318_v38 = vsel %vm133_vm12, 1.0, %v2936_v10 }
 0x4eb   :  { %2660 = vmatprep.subr.bf16.mxu0 %v2934_v1 }
 0x4f1   :  { %v2826_v56 = vpop.eup %2825 }
 0x4f2   :  { %2663 = vmatpush3.bf16.xpose.msk.msra.mxu0 %vm3245_vm10, %v2661_v47  ;;  %v420_v57 = vadd.f32 1.0, %v2826_v56  ;;  %v2770_v56 = vld [vmem:[%s3667_s13 + $0x8] sm:$0xff]  }
 0x4f3   :  { %2677 = vmatprep.subr.bf16.mxu0 %v3305_v16 }
 0x4f4   :  { %2827 = vrcp.f32 %v420_v57 }
 0x4fe   :  { %v2828_v7 = vpop.eup %2827 }
 0x4ff   :  { %v423_v13 = vmul.f32 %v2828_v7, %v411_v27 }
 0x556   :  { %v568_v49 = vpop.permute.xlu0 %567 }
 0x557   :  { %v570_v51 = vmul.f32 %v568_v49, %v565_v48  ;;  %v139_v48 = vmul.f32 0.125, %v3264_v43 }
 0x558   :  { %v472_v52 = vpop.permute.xlu1 %471 }
 0x559   :  { %572 = vrot.lane.b32.xlu1 %v570_v51, %s2937_s3  ;;  %2493 = vmatmul.mubr.msk.f32.vlgmr.msra.gmra.mrb[0].mxu0 %vm232_vm3, %v472_v52  ;;  %v3327_v49 = vpack.c.bf16 %v139_v48, %v138_v17  ;;  %v2776_v17 = vld [vmem:[%s3673_s19 + $0x4] ss:$8 sps:$4 sm:$0xff]   ;;  %v2777_v48 = vld [vmem:[%s3672_s18 + $0x10] ss:$8 sps:$4 sm:$0xff]  }
 0x55a   :  { %2679 = vmatpush3.bf16.msra.mxu0 %v3305_v16 }
 0x55b   :  { %2681 = vmatprep.subr.bf16.mxu0 %v3327_v49 }
 0x55d   :  { %2736 = vrot.lane.b32.xlu1 %v2735_v53, %s2939_s26 }
 0x55e   :  { %2683 = vmatpush3.bf16.msra.mxu0 %v3327_v49 }
 0x55f   :  { %972 = vmatprep.subr.bf16.mxu0 %v2776_v17 }
 0x561   :  { %2741 = vrot.lane.b32.xlu1 %v2740_v54, %s2939_s26 }
 0x5cb   :  { %v573_v58 = vpop.permute.xlu1 %572 }
 0x5cc   :  { %2504 = vmatmul.mubr.msk.f32.vlgmr.msra.gmra.mrb[2].mxu1 %vm232_vm3, %v573_v58 }
 0x5cd   :  { %2514 = vmatprep.mubr.msk.f32.mxu1 %vm2935_vm0, %v2936_v10 }
 0x5cf   :  { %v3284_v59 = vpop.permute.xlu1 %2736 }
 0x5d0   :  { %v2739_v60 = vunpack.i.h.bf16 %v3284_v59  ;;  %v2738_v61 = vunpack.i.l.bf16 %v3284_v59 }
 0x5d2   :  { %v467_v62 = vmul.f32 %v2739_v60, %v411_v27  ;;  %v466_v2 = vmul.f32 %v2738_v61, %v411_v27 }
 0x5d3   :  { %v3292_v3 = vpop.permute.xlu1 %2741 }
 0x5d4   :  { %v2744_v4 = vunpack.i.h.bf16 %v3292_v3  ;;  %v2743_v5 = vunpack.i.l.bf16 %v3292_v3  ;;  %v2745_v6 = vpack.i.bf16 %v467_v62, %v466_v2 }
 0x5d6   :  { %v469_v9 = vmul.f32 %v2744_v4, %v411_v27  ;;  %v468_v11 = vmul.f32 %v2743_v5, %v411_v27  ;;  %2746 = vrot.lane.b32.xlu1 %v2745_v6, %s2940_s2 }
 0x5d8   :  { %v2750_v12 = vpack.i.bf16 %v469_v9, %v468_v11  ;;  %v2238_v11 = vld [vmem:[%s3670_s16] ss:$0 sm:$0xff] }
 0x5da   :  { %2751 = vrot.lane.b32.xlu0 %v2750_v12, %s2940_s2  ;;  %844 = vrot.lane.b32.xlu1 %v423_v13, %s2939_s26  ;;  %v2239_v13 = vld [vmem:[#allocation5] ss:$0 sm:$0xff] }
 0x62c   :  { %v553_v18 = vpop.f32.mrb[0].mxu0 }
 0x62d   :  { %v2494_v19 = vpop.f32.mrb[1].mxu0  ;;  %v646_v41 = vmul.f32 %v3315_v37, %v553_v18 }
 0x648   :  { %v2747_v20 = vpop.permute.xlu1 %2746 }
 0x649   :  { %v2749_v21 = vunpack.i.h.bf16 %v2747_v20  ;;  %v2748_v24 = vunpack.i.l.bf16 %v2747_v20 }
 0x64b   :  { %v2671_v25 = vpack.c.bf16 %v2749_v21, %v2748_v24 }
 0x64c   :  { %v2752_v27 = vpop.permute.xlu0 %2751  ;;  %v845_v18 = vpop.permute.xlu1 %844 }
 0x64d   :  { %v2754_v32 = vunpack.i.h.bf16 %v2752_v27  ;;  %v2753_v33 = vunpack.i.l.bf16 %v2752_v27  ;;  %2672 = vmatpush3.bf16.msra.mxu1 %v2671_v25 }
 0x64e   :  { %2673 = vmatprep.subr.bf16.mxu1 %v2934_v1 }
 0x64f   :  { %v2674_v34 = vpack.c.bf16 %v2754_v32, %v2753_v33 }
 0x651   :  { %2675 = vmatpush3.bf16.msra.mxu1 %v2674_v34 }
 0x652   :  { %2528 = vmatprep.subr.bf16.mxu1 %v2936_v10 }
 0x69f   :  { %v642_v39 = vpop.f32.mrb[2].mxu1 }
 0x6a0   :  { %v647_v44 = vmul.f32 %v3318_v38, %v642_v39  ;;  %v2505_v45 = vpop.f32.mrb[3].mxu1 }
 0x6a1   :  { %v2771_v45 = vld [vmem:[%s3672_s18] ss:$8 sps:$4 sm:$0xff]  }
 0x6a2   :  { %v648_v47 = vadd.f32 %v647_v44, %v646_v41 }
 0x6a4   :  { %2515 = vmatmul.mubr.msk.f32.vlgmr.msra.gmra.mrb[8].mxu1 %vm232_vm3, %v648_v47  ;;  %v2774_v47 = vld [vmem:[%s3673_s19] ss:$8 sps:$4 sm:$0xff]  }
 0x6a5   :  { %2532 = vmatprep.mubr.msk.bf16.mxu1 %vm2935_vm0, %v2936_v10  ;;  %2529 = vmatpush3.bf16.msra.mxu1 %v2769_v55 }
 0x6a6   :  { %2530 = vmatprep.subr.bf16.mxu1 %v2936_v10 }
 0x6a9   :  { %2531 = vmatpush3.bf16.msra.mxu1 %v2770_v56 }
 0x777   :  { %v734_v51 = vpop.f32.mrb[8].mxu1 }
 0x778   :  { %v738_v52 = vmul.f32 0.125, %v734_v51  ;;  %v2516_v53 = vpop.f32.mrb[9].mxu1  ;;  %v2779_v51 = vld [vmem:[%s3672_s18 + $0x14] ss:$8 sps:$4 sm:$0xff]  }
 0x779   :  { %v2780_v53 = vld [vmem:[%s3673_s19 + $0x10] ss:$8 sps:$4 sm:$0xff]  }
 0x77a   :  { %v739_v54 = vmul.f32 %v738_v52, %v738_v52  ;;  %2525 = vmatprep.mubr.msk.f32.mxu0 %vm232_vm3, %v738_v52 }
 0x77c   :  { %2526 = vmatmul.mubr.msk.f32.vlgmr.msra.gmra.mrb[2].mxu0 %vm232_vm3, %v739_v54 }
 0x77d   :  { %1004 = vmatprep.mubr.bf16.mxu0 %v2933_v0  ;;  %973 = vmatpush1.bf16.msra.mxu0 %v2774_v47 }
 0x84f   :  { %v2527_v57 = vpop.f32.mrb[2].mxu0 }
 0x850   :  { %v812_v58 = vpop.f32.mrb[3].mxu0 }
 0x851   :  { %v821_v62 = vmul.f32 %v812_v58, %v812_v58  ;;  %v823_v7 = vsub.f32 %v738_v52, %v812_v58  ;;  %v2782_v52 = vld [vmem:[%s3673_s19 + $0x14] ss:$8 sps:$4 sm:$0xff]   ;;  %v2243_v58 = vld [vmem:[%s3663_s9] ss:$0 sm:$0xff] }
 0x852   :  { %974 = vmatprep.subr.bf16.mxu0 %v2782_v52 }
 0x853   :  { %v822_v2 = vsub.f32 %v2527_v57, %v821_v62  ;;  %975 = vmatpush1.bf16.msra.mxu0 %v2780_v53 }
 0x854   :  { %2536 = vmatprep.subr.bf16.mxu0 %v2936_v10 }
 0x855   :  { %v824_v6 = vadd.f32 1e-05, %v822_v2  ;;  %v2244_v2 = vld [vmem:[%s3664_s10] ss:$0 sm:$0xff] }
 0x857   :  { %2829 = vrsqrt.f32 %v824_v6 }
 0x861   :  { %v2830_v9 = vpop.eup %2829 }
 0x862   :  { %v826_v12 = vmul.f32 %v2830_v9, %v823_v7 }
 0x864   :  { %v834_v14 = vmul.f32 %v2238_v11, %v826_v12 }
 0x866   :  { %v842_v15 = vadd.f32 %v2239_v13, %v834_v14  ;;  %v2783_v13 = vld [vmem:[%s3675_s21] sm:$0xff]  }
 0x868   :  { %v847_v19 = vmul.f32 %v845_v18, %v842_v15  ;;  %v2784_v15 = vld [vmem:[%s3675_s21 + $0x8] sm:$0xff]   ;;  %v2785_v18 = vld [vmem:[%s3675_s21 + $0x10] sm:$0xff]  }
 0x86a   :  { %v848_v20 = vpack.c.bf16 %v847_v19, %v847_v19  ;;  %v2786_v19 = vld [vmem:[%s3675_s21 + $0x18] sm:$0xff]  }
 0x86c   :  { %2533 = vmatmul.mubr.msk.bf16.vlgmr.msra.gmra.mrb[12].mxu1 %vm232_vm3, %v848_v20  ;;  %v2787_v20 = vld [vmem:[%s3675_s21 + $0x20] sm:$0xff]  }
 0x86d   :  { %1068 = vmatprep.mubr.bf16.mxu1 %v2933_v0 }
 0x93f   :  { %v902_v21 = vpop.f32.mrb[12].mxu1 }
 0x940   :  { %v3347_v24 = vadd.f32 %v902_v21, %v3139_v36  ;;  %v2534_v25 = vpop.f32.mrb[13].mxu1  ;;  %v2773_v36 = vld [vmem:[%s3672_s18 + $0x4] ss:$8 sps:$4 sm:$0xff]  }
 0x941   :  { %v905_v27 = vpop.f32.mrb[14].mxu1  ;;  %1036 = vmatprep.subr.bf16.mxu1 %v2773_v36  ;;  %v2788_v21 = vld [vmem:[%s3675_s21 + $0x28] sm:$0xff]   ;;  %v2789_v25 = vld [vmem:[%s3675_s21 + $0x30] sm:$0xff]  }
 0x942   :  { %v2535_v32 = vpop.f32.mrb[15].mxu1  ;;  %v910_v33 = vsel %vm232_vm3, %v3347_v24, 0.0  ;;  %1037 = vmatpush1.bf16.msra.mxu1 %v2771_v45  ;;  %v2790_v27 = vld [vmem:[%s3675_s21 + $0x38] sm:$0xff]  }
 0x943   :  { %911 = vadd.xlane.f32.xlu0 %v910_v33  ;;  %1038 = vmatprep.subr.bf16.mxu1 %v2779_v51  ;;  %v1081_v32 = vsub.s32 0, %v3156_v46 }
 0x946   :  { %1039 = vmatpush1.bf16.msra.mxu1 %v2777_v48 }
 0x947   :  { %2556 = vmatprep.subr.bf16.mxu1 %v2936_v10 }
 0x9d0   :  { %v912_v34 = vpop.xlane.xlu0 %911 }
 0x9d1   :  { %v913_v35 = vmul.f32 0.03125, %v912_v34  ;;  %v1077_v34 = vld [vmem:[%s3674_s20] sm:$0x3] }
 0x9d2   :  { %v1082_v36 = vrot.slane %v1077_v34, %v1081_v32 }
 0x9d3   :  { %v914_v39 = vsub.f32 %v3347_v24, %v913_v35  ;;  %v1085_v35 = vsub.s32 1, %v3156_v46  ;;  %v2350_v46 = vld [vmem:[%s3676_s22 + $0x1] ss:$0 sm:$0xff] }
 0x9d5   :  { %v915_v41 = vmul.f32 %v914_v39, %v914_v39  ;;  %v1086_v47 = vrot.slane %v1077_v34, %v1085_v35 }
 0x9d7   :  { %v916_v44 = vsel %vm232_vm3, %v915_v41, 0.0 }
 0x9d8   :  { %917 = vadd.xlane.f32.xlu1 %v916_v44 }
 0xa65   :  { %v918_v54 = vpop.xlane.xlu1 %917 }
 0xa66   :  { %v919_v55 = vmul.f32 0.03125, %v918_v54 }
 0xa68   :  { %v920_v56 = vadd.f32 1e-05, %v919_v55 }
 0xa6a   :  { %2831 = vrsqrt.f32 %v920_v56 }
 0xa74   :  { %v2832_v57 = vpop.eup %2831 }
 0xa75   :  { %v922_v62 = vmul.f32 %v2832_v57, %v914_v39 }
 0xa77   :  { %v929_v6 = vmul.f32 %v2243_v58, %v922_v62 }
 0xa79   :  { %v936_v7 = vadd.f32 %v2244_v2, %v929_v6  ;;  %v2255_v2 = vld [vmem:[%s3676_s22] ss:$0 sm:$0xff] }
 0xa7b   :  { %v939_v9 = vpack.c.bf16 %v936_v7, %v936_v7  ;;  %v937_v11 = vrot.slane %v936_v7, 7 }
 0xa7d   :  { %2254 = vmatmul.mubr.msk.bf16.vlgmr.msra.gmra.mrb[16].mxu1 %vm232_vm3, %v939_v9  ;;  %v938_v12 = vmul.f32 %v937_v11, %v3173_v63 }
 0xa7e   :  { %2560 = vmatprep.mubr.msk.bf16.mxu1 %vm2935_vm0, %v2936_v10 }
 0xa7f   :  { %v944_v14 = vpack.c.bf16 %v938_v12, %v938_v12 }
 0xa81   :  { %2249 = vmatmul.mubr.msk.bf16.vlgmr.msra.gmra.mrb[4].mxu0 %vm232_vm3, %v944_v14 }
 0xa82   :  { %2537 = vmatpush3.bf16.msra.mxu0 %v2783_v13  ;;  %2552 = vmatprep.mubr.msk.bf16.mxu0 %vm2935_vm0, %v2936_v10 }
 0xa83   :  { %2538 = vmatprep.subr.bf16.mxu0 %v2936_v10 }
 0xa86   :  { %2539 = vmatpush3.bf16.msra.mxu0 %v2784_v15 }
 0xa87   :  { %2540 = vmatprep.subr.bf16.mxu0 %v2936_v10 }
 0xa8a   :  { %2541 = vmatpush3.bf16.msra.mxu0 %v2785_v18 }
 0xa8b   :  { %2542 = vmatprep.subr.bf16.mxu0 %v2936_v10 }
 0xa8e   :  { %2543 = vmatpush3.bf16.msra.mxu0 %v2786_v19 }
 0xa8f   :  { %2544 = vmatprep.subr.bf16.mxu0 %v2936_v10 }
 0xa92   :  { %2545 = vmatpush3.bf16.msra.mxu0 %v2787_v20 }
 0xa93   :  { %2546 = vmatprep.subr.bf16.mxu0 %v2936_v10 }
 0xa96   :  { %2547 = vmatpush3.bf16.msra.mxu0 %v2788_v21  ;;  %v2791_v21 = vld [vmem:[%s3666_s12 + $0x10] sm:$0xff]  }
 0xa97   :  { %2548 = vmatprep.subr.bf16.mxu0 %v2936_v10  ;;  %2557 = vmatpush3.bf16.msra.mxu1 %v2791_v21 }
 0xa98   :  { %2558 = vmatprep.subr.bf16.mxu1 %v2936_v10 }
 0xa9a   :  { %2549 = vmatpush3.bf16.msra.mxu0 %v2789_v25  ;;  %v2291_v25 = vld [vmem:[%s3669_s15 + $0x1] ss:$0 sm:$0xff] }
 0xa9b   :  { %2550 = vmatprep.subr.bf16.mxu0 %v2936_v10  ;;  %1497 = vrot.lane.b32.xlu1 %v2291_v25, %s2937_s3 }
 0xa9e   :  { %2551 = vmatpush3.bf16.msra.mxu0 %v2790_v27  ;;  %v2285_v27 = vld [vmem:[#allocation2 + $0x1] ss:$0 sm:$0xff] }
 0xa9f   :  { %2692 = vmatprep.subr.bf16.mxu0 %v2934_v1 }
 0xb0d   :  { %v1498_v21 = vpop.permute.xlu1 %1497 }
 0xb50   :  { %v1070_v33 = vpop.f32.mrb[16].mxu1 }
 0xb51   :  { %v1072_v39 = vpop.f32.mrb[17].mxu1 }
 0xb52   :  { %v1074_v41 = vpop.f32.mrb[18].mxu1 }
 0xb53   :  { %v1075_v44 = vpop.f32.mrb[19].mxu1 }
 0xb54   :  { %v1006_v45 = vpop.f32.mrb[4].mxu0 }
 0xb55   :  { %v1071_v17 = vadd.f32 %v1070_v33, %v1006_v45  ;;  %v1008_v48 = vpop.f32.mrb[5].mxu0  ;;  %v1385_v33 = vmul.f32 %v2285_v27, %v3163_v50 }
 0xb56   :  { %v1073_v51 = vadd.f32 %v1072_v39, %v1008_v48  ;;  %v1010_v52 = vpop.f32.mrb[6].mxu0  ;;  %v2268_v48 = vld [vmem:[%s3662_s8 + $0x1] ss:$0 sm:$0xff] }
 0xb57   :  { %v1089_v53 = vadd.f32 %v1082_v36, %v1071_v17  ;;  %v1011_v54 = vpop.f32.mrb[7].mxu0  ;;  %v1386_v34 = vmul.f32 1.442695, %v1385_v33 }
 0xb58   :  { %v1090_v55 = vadd.f32 %v1086_v47, %v1073_v51  ;;  %v2267_v47 = vld [vmem:[%s3693_s17 + $0x1] ss:$0 sm:$0xff]  ;;  %v2793_v54 = vld [vmem:[%s3665_s11 + $0x10] sm:$0xff]  }
 0xb59   :  { %v1091_v56 = vmax.f32 %v1089_v53, 0.0 }
 0xb5a   :  { %v2264_v62 = vmul.f32 -1.442695, %v1090_v55 }
 0xb5b   :  { %v1092_v57 = vmul.f32 %v1091_v56, %v1091_v56  ;;  %v2794_v56 = vld [vmem:[%s3665_s11 + $0x18] sm:$0xff]  }
 0xb5c   :  { %2833 = vpow2.f32 %v2264_v62 }
 0xb5d   :  { %v1093_v58 = vpack.c.bf16 %v1092_v57, %v1092_v57 }
 0xb5f   :  { %2553 = vmatmul.mubr.bf16.vlgmr.msra.gmra.mrb[8].mxu0 %v1093_v58  ;;  %v1393_v58 = vmul.f32 %v2285_v27, %v3190_v8 }
 0xb60   :  { %2694 = vmatpush3.bf16.msk.msra.mxu0 %vm2665_vm6, %v2938_v26  ;;  %2591 = vmatprep.mubr.msk.f32.mxu0 %vm2935_vm0, %v2936_v10 }
 0xb61   :  { %2695 = vmatprep.subr.bf16.mxu0 %v2934_v1  ;;  %v1394_v62 = vmul.f32 1.442695, %v1393_v58 }
 0xb64   :  { %2697 = vmatpush3.bf16.msk.msra.mxu0 %vm2668_vm9, %v2938_v26 }
 0xb65   :  { %2705 = vmatprep.subr.bf16.mxu0 %v3305_v16 }
 0xb66   :  { %v2834_v23 = vpop.eup %2833 }
 0xb67   :  { %v1208_v22 = vadd.f32 1.0, %v2834_v23 }
 0xb69   :  { %2835 = vrcp.f32 %v1208_v22 }
 0xb6a   :  { %2837 = vpow2.f32 %v1386_v34 }
 0xb73   :  { %v2836_v11 = vpop.eup %2835 }
 0xb74   :  { %v2838_v39 = vpop.eup %2837 }
 0xc32   :  { %v1199_v6 = vpop.f32.mrb[8].mxu0 }
 0xc33   :  { %v1200_v7 = vadd.f32 %v2255_v2, %v1199_v6  ;;  %v2554_v9 = vpop.f32.mrb[9].mxu0 }
 0xc34   :  { %v1202_v31 = vpop.f32.mrb[10].mxu0 }
 0xc35   :  { %v1211_v12 = vmul.f32 %v2836_v11, %v1200_v7  ;;  %v2555_v30 = vpop.f32.mrb[11].mxu0 }
 0xc37   :  { %v3453_v26 = vadd.f32 %v1211_v12, %v3347_v24  ;;  %v2792_v24 = vld [vmem:[%s3666_s12 + $0x18] sm:$0xff]  }
 0xc38   :  { %2559 = vmatpush3.bf16.msra.mxu1 %v2792_v24 }
 0xc39   :  { %v1217_v13 = vsel %vm232_vm3, %v3453_v26, 0.0  ;;  %2564 = vmatprep.subr.bf16.mxu1 %v2936_v10 }
 0xc3a   :  { %1218 = vadd.xlane.f32.xlu0 %v1217_v13 }
 0xcc7   :  { %v1219_v14 = vpop.xlane.xlu0 %1218 }
 0xcc8   :  { %v1220_v15 = vmul.f32 0.03125, %v1219_v14 }
 0xcca   :  { %v1221_v18 = vsub.f32 %v3453_v26, %v1220_v15 }
 0xccc   :  { %v1222_v19 = vmul.f32 %v1221_v18, %v1221_v18 }
 0xcce   :  { %v1223_v20 = vsel %vm232_vm3, %v1222_v19, 0.0 }
 0xccf   :  { %1224 = vadd.xlane.f32.xlu0 %v1223_v20 }
 0xce5   :  { %1389 = vrot.lane.b32.xlu0 %v2838_v39, %s2937_s3 }
 0xd5c   :  { %v1225_v41 = vpop.xlane.xlu0 %1224 }
 0xd5d   :  { %v1226_v44 = vmul.f32 0.03125, %v1225_v41 }
 0xd5f   :  { %v1227_v36 = vadd.f32 1e-05, %v1226_v44 }
 0xd60   :  { %v1390_v22 = vpop.permute.xlu0 %1389 }
 0xd61   :  { %2839 = vrsqrt.f32 %v1227_v36 }
 0xd62   :  { %2841 = vpow2.f32 %v1394_v62 }
 0xd6b   :  { %v2840_v45 = vpop.eup %2839 }
 0xd6c   :  { %v1229_v17 = vmul.f32 %v2840_v45, %v1221_v18  ;;  %v2842_v23 = vpop.eup %2841 }
 0xd6e   :  { %v1236_v50 = vmul.f32 %v2267_v47, %v1229_v17 }
 0xd70   :  { %v1243_v51 = vadd.f32 %v2268_v48, %v1236_v50 }
 0xd72   :  { %v1244_v52 = vrot.slane %v1243_v51, 7  ;;  %v1246_v57 = vpack.c.bf16 %v1243_v51, %v1243_v51 }
 0xd74   :  { %v1245_v53 = vmul.f32 %v1244_v52, %v3173_v63 }
 0xd76   :  { %v1252_v55 = vpack.c.bf16 %v1245_v53, %v1245_v53 }
 0xd78   :  { %2561 = vmatmul.mubr.msk.bf16.vlgmr.msra.gmra.mrb[20].mxu1 %vm232_vm3, %v1252_v55 }
 0xd79   :  { %2565 = vmatpush3.bf16.msra.mxu1 %v2793_v54  ;;  %2568 = vmatprep.mubr.msk.bf16.mxu1 %vm2935_vm0, %v2936_v10 }
 0xd7a   :  { %2566 = vmatprep.subr.bf16.mxu1 %v2936_v10 }
 0xd7d   :  { %2567 = vmatpush3.bf16.msra.mxu1 %v2794_v56 }
 0xd7e   :  { %2684 = vmatprep.subr.bf16.mxu1 %v2934_v1 }
 0xd84   :  { %2569 = vmatmul.mubr.msk.bf16.vlgmr.msra.gmra.mrb[20].mxu1 %vm232_vm3, %v1246_v57 }
 0xd85   :  { %2580 = vmatprep.mubr.msk.f32.mxu1 %vm2935_vm0, %v2936_v10 }
 0xe57   :  { %v1362_v2 = vpop.f32.mrb[20].mxu1 }
 0xe58   :  { %1502 = vrot.lane.b32.xlu1 %v1362_v2, %s2937_s3  ;;  %v2570_v6 = vpop.f32.mrb[21].mxu1  ;;  %v1396_v7 = vmul.f32 %v2842_v23, %v1362_v2  ;;  %v1392_v9 = vmul.f32 %v1390_v22, %v1362_v2  ;;  %v2283_v31 = vmul.f32 -1.442695, %v1362_v2  ;;  %v1401_v8 = vmul.f32 %v2738_v61, %v1362_v2 }
 0xe59   :  { %v1365_v11 = vpop.f32.mrb[22].mxu1  ;;  %v1402_v14 = vmul.f32 %v2739_v60, %v1362_v2  ;;  %v1500_v24 = vmul.f32 %v1498_v21, %v1362_v2  ;;  %v2802_v21 = vld [vmem:[%s3673_s19 + $0x24] ss:$8 sps:$4 sm:$0xff]  }
 0xe5a   :  { %v2571_v12 = vpop.f32.mrb[23].mxu1  ;;  %v1397_v30 = vmul.f32 %v3219_v28, %v1396_v7  ;;  %v1398_v13 = vmul.f32 %v3224_v29, %v1396_v7  ;;  %2843 = vpow2.f32 %v2283_v31  ;;  %v1399_v28 = vmul.f32 %v3259_v42, %v1396_v7 }
 0xe5b   :  { %v2755_v18 = vpack.i.bf16 %v1402_v14, %v1401_v8  ;;  %v1400_v29 = vmul.f32 %v3264_v43, %v1396_v7  ;;  %v1403_v42 = vmul.f32 %v2743_v5, %v1362_v2  ;;  %v1404_v43 = vmul.f32 %v2744_v4, %v1362_v2  ;;  %v2302_v7 = vld [vmem:[#allocation5 + $0x1] ss:$0 sm:$0xff] }
 0xe5c   :  { %1406 = vrot.lane.b32.xlu1 %v1392_v9, %s2937_s3  ;;  %v2685_v15 = vpack.c.bf16 %v1398_v13, %v1397_v30 }
 0xe5d   :  { %v2689_v61 = vpack.c.bf16 %v1400_v29, %v1399_v28  ;;  %v2760_v33 = vpack.i.bf16 %v1404_v43, %v1403_v42  ;;  %v2806_v42 = vld [vmem:[%s3673_s19 + $0x30] ss:$8 sps:$4 sm:$0xff]  }
 0xe5e   :  { %2687 = vmatpush3.bf16.xpose.msk.msra.mxu1 %vm3245_vm10, %v2685_v15 }
 0xe5f   :  { %2688 = vmatprep.subr.bf16.mxu1 %v2934_v1 }
 0xe60   :  { %2756 = vrot.lane.b32.xlu1 %v2755_v18, %s2940_s2 }
 0xe64   :  { %v2844_v19 = vpop.eup %2843 }
 0xe65   :  { %v1371_v59 = vadd.f32 1.0, %v2844_v19 }
 0xe66   :  { %2691 = vmatpush3.bf16.xpose.msk.msra.mxu1 %vm3245_vm10, %v2689_v61 }
 0xe67   :  { %2698 = vmatprep.subr.bf16.mxu1 %v2934_v1  ;;  %2845 = vrcp.f32 %v1371_v59 }
 0xe71   :  { %v2846_v60 = vpop.eup %2845 }
 0xe72   :  { %v1374_v20 = vmul.f32 %v2846_v60, %v1362_v2  ;;  %v2301_v2 = vld [vmem:[%s3670_s16 + $0x1] ss:$0 sm:$0xff] }
 0xe74   :  { %1781 = vrot.lane.b32.xlu1 %v1374_v20, %s2939_s26  ;;  %v2800_v20 = vld [vmem:[%s3673_s19 + $0x20] ss:$8 sps:$4 sm:$0xff]  }
 0xeca   :  { %v1503_v25 = vpop.permute.xlu1 %1502 }
 0xecb   :  { %v1505_v27 = vmul.f32 %v1503_v25, %v1500_v24  ;;  %v2803_v24 = vld [vmem:[%s3672_s18 + $0x30] ss:$8 sps:$4 sm:$0xff]   ;;  %v2805_v25 = vld [vmem:[%s3672_s18 + $0x34] ss:$8 sps:$4 sm:$0xff]  }
 0xecd   :  { %1507 = vrot.lane.b32.xlu0 %v1505_v27, %s2937_s3  ;;  %v2808_v27 = vld [vmem:[%s3673_s19 + $0x34] ss:$8 sps:$4 sm:$0xff]  }
 0xece   :  { %v1407_v40 = vpop.permute.xlu1 %1406 }
 0xecf   :  { %2581 = vmatmul.mubr.msk.f32.vlgmr.msra.gmra.mrb[10].mxu1 %vm232_vm3, %v1407_v40 }
 0xed0   :  { %2602 = vmatprep.mubr.msk.f32.mxu1 %vm2935_vm0, %v2936_v10 }
 0xed1   :  { %2761 = vrot.lane.b32.xlu0 %v2760_v33, %s2940_s2 }
 0xed2   :  { %v2757_v34 = vpop.permute.xlu1 %2756 }
 0xed3   :  { %v2759_v39 = vunpack.i.h.bf16 %v2757_v34  ;;  %v2758_v41 = vunpack.i.l.bf16 %v2757_v34 }
 0xed5   :  { %v2699_v44 = vpack.c.bf16 %v2759_v39, %v2758_v41  ;;  %v2312_v39 = vld [vmem:[%s3663_s9 + $0x1] ss:$0 sm:$0xff] }
 0xed7   :  { %2700 = vmatpush3.bf16.msra.mxu1 %v2699_v44  ;;  %v2313_v44 = vld [vmem:[%s3664_s10 + $0x1] ss:$0 sm:$0xff] }
 0xed8   :  { %2701 = vmatprep.subr.bf16.mxu1 %v2934_v1 }
 0xee6   :  { %v1782_v31 = vpop.permute.xlu1 %1781 }
 0xf3f   :  { %v1508_v3 = vpop.permute.xlu0 %1507 }
 0xf40   :  { %2592 = vmatmul.mubr.msk.f32.vlgmr.msra.gmra.mrb[12].mxu0 %vm232_vm3, %v1508_v3 }
 0xf41   :  { %2707 = vmatpush3.bf16.msra.mxu0 %v3305_v16 }
 0xf42   :  { %2709 = vmatprep.subr.bf16.mxu0 %v3327_v49 }
 0xf43   :  { %v2762_v4 = vpop.permute.xlu0 %2761 }
 0xf44   :  { %v2764_v5 = vunpack.i.h.bf16 %v2762_v4  ;;  %v2763_v36 = vunpack.i.l.bf16 %v2762_v4 }
 0xf45   :  { %2711 = vmatpush3.bf16.msra.mxu0 %v3327_v49 }
 0xf46   :  { %v2702_v45 = vpack.c.bf16 %v2764_v5, %v2763_v36  ;;  %1914 = vmatprep.subr.bf16.mxu0 %v2802_v21 }
 0xf48   :  { %2703 = vmatpush3.bf16.msra.mxu1 %v2702_v45 }
 0xf49   :  { %2616 = vmatprep.subr.bf16.mxu1 %v2936_v10 }
 0xfa2   :  { %v1488_v47 = vpop.f32.mrb[10].mxu1 }
 0xfa3   :  { %v2582_v17 = vpop.f32.mrb[11].mxu1  ;;  %v1581_v1 = vmul.f32 %v3315_v37, %v1488_v47  ;;  %v2795_v37 = vld [vmem:[%s3667_s13 + $0x10] sm:$0xff]   ;;  %v2809_v47 = vld [vmem:[%s3675_s21 + $0x40] sm:$0xff]  }
0x1013   :  { %v1577_v48 = vpop.f32.mrb[12].mxu0 }
0x1014   :  { %v1582_v50 = vmul.f32 %v3318_v38, %v1577_v48  ;;  %v2593_v51 = vpop.f32.mrb[13].mxu0  ;;  %v2796_v38 = vld [vmem:[%s3667_s13 + $0x18] sm:$0xff]   ;;  %v2810_v48 = vld [vmem:[%s3675_s21 + $0x48] sm:$0xff]  }
0x1015   :  { %v2814_v51 = vld [vmem:[%s3675_s21 + $0x68] sm:$0xff]  }
0x1016   :  { %v1583_v16 = vadd.f32 %v1582_v50, %v1581_v1  ;;  %v2812_v1 = vld [vmem:[%s3675_s21 + $0x58] sm:$0xff]   ;;  %v2813_v50 = vld [vmem:[%s3675_s21 + $0x60] sm:$0xff]  }
0x1018   :  { %2603 = vmatmul.mubr.msk.f32.vlgmr.msra.gmra.mrb[24].mxu1 %vm232_vm3, %v1583_v16  ;;  %v2815_v16 = vld [vmem:[%s3675_s21 + $0x70] sm:$0xff]  }
0x1019   :  { %2620 = vmatprep.mubr.msk.bf16.mxu1 %vm2935_vm0, %v2936_v10  ;;  %2617 = vmatpush3.bf16.msra.mxu1 %v2795_v37 }
0x101a   :  { %2618 = vmatprep.subr.bf16.mxu1 %v2936_v10 }
0x101d   :  { %2619 = vmatpush3.bf16.msra.mxu1 %v2796_v38 }
0x10eb   :  { %v1669_v52 = vpop.f32.mrb[24].mxu1 }
0x10ec   :  { %v1673_v49 = vmul.f32 0.125, %v1669_v52  ;;  %v2604_v53 = vpop.f32.mrb[25].mxu1  ;;  %v2816_v52 = vld [vmem:[%s3675_s21 + $0x78] sm:$0xff]  }
0x10ed   :  { %v2332_v53 = vld [vmem:[%s3674_s20 + $0x2] sm:$0x3] }
0x10ee   :  { %v1674_v54 = vmul.f32 %v1673_v49, %v1673_v49  ;;  %2613 = vmatprep.mubr.msk.f32.mxu0 %vm232_vm3, %v1673_v49 }
0x10f0   :  { %2614 = vmatmul.mubr.msk.f32.vlgmr.msra.gmra.mrb[14].mxu0 %vm232_vm3, %v1674_v54 }
0x10f1   :  { %1946 = vmatprep.mubr.bf16.mxu0 %v2933_v0  ;;  %1915 = vmatpush1.bf16.msra.mxu0 %v2800_v20 }
0x10f2   :  { %1916 = vmatprep.subr.bf16.mxu0 %v2808_v27  ;;  %v2360_v27 = vld [vmem:[%s3704_s27] ss:$0 sm:$0xff] }
0x10f5   :  { %1917 = vmatpush1.bf16.msra.mxu0 %v2806_v42  ;;  %v2361_v42 = vld [vmem:[%s3705_s29] ss:$0 sm:$0xff] }
0x10f6   :  { %2624 = vmatprep.subr.bf16.mxu0 %v2936_v10 }
0x11c3   :  { %v2615_v55 = vpop.f32.mrb[14].mxu0 }
0x11c4   :  { %v1747_v56 = vpop.f32.mrb[15].mxu0 }
0x11c5   :  { %v1756_v57 = vmul.f32 %v1747_v56, %v1747_v56  ;;  %v1758_v23 = vsub.f32 %v1673_v49, %v1747_v56 }
0x11c7   :  { %v1757_v58 = vsub.f32 %v2615_v55, %v1756_v57  ;;  %v2025_v55 = vrot.slane %v2332_v53, %v1081_v32 }
0x11c9   :  { %v1759_v62 = vadd.f32 1e-05, %v1757_v58 }
0x11cb   :  { %2847 = vrsqrt.f32 %v1759_v62 }
0x11d5   :  { %v2848_v22 = vpop.eup %2847 }
0x11d6   :  { %v1761_v6 = vmul.f32 %v2848_v22, %v1758_v23 }
0x11d8   :  { %v1770_v9 = vmul.f32 %v2301_v2, %v1761_v6 }
0x11da   :  { %v1779_v11 = vadd.f32 %v2302_v7, %v1770_v9 }
0x11dc   :  { %v1784_v12 = vmul.f32 %v1782_v31, %v1779_v11 }
0x11de   :  { %v1785_v30 = vpack.c.bf16 %v1784_v12, %v1784_v12 }
0x11e0   :  { %2621 = vmatmul.mubr.msk.bf16.vlgmr.msra.gmra.mrb[28].mxu1 %vm232_vm3, %v1785_v30 }
0x11e1   :  { %2010 = vmatprep.mubr.bf16.mxu1 %v2933_v0  ;;  %v2799_v0 = vld [vmem:[%s3672_s18 + $0x24] ss:$8 sps:$4 sm:$0xff]  }
0x11e2   :  { %1978 = vmatprep.subr.bf16.mxu1 %v2799_v0 }
0x12b3   :  { %v1840_v13 = vpop.f32.mrb[28].mxu1 }
0x12b4   :  { %v3549_v8 = vadd.f32 %v1840_v13, %v3453_v26  ;;  %v2622_v14 = vpop.f32.mrb[29].mxu1  ;;  %v2797_v26 = vld [vmem:[%s3672_s18 + $0x20] ss:$8 sps:$4 sm:$0xff]   ;;  %s2941_s18 = smov [#allocation7]  }
0x12b5   :  { %v1843_v15 = vpop.f32.mrb[30].mxu1  ;;  %1979 = vmatpush1.bf16.msra.mxu1 %v2797_v26  ;;  %s2194_s17 = sshll.u32 %s2941_s18, 4  ;;  %s2195_s17 = int_to_ptr.vmem [resolvable:$true] %s2194_s17 }
0x12b6   :  { %v2623_v18 = vpop.f32.mrb[31].mxu1  ;;  %v1850_v28 = vsel %vm232_vm3, %v3549_v8, 0.0  ;;  %1980 = vmatprep.subr.bf16.mxu1 %v2805_v25  ;;  %s2901_s8 = scalar_lea.vmem %s2195_s17, 128  ;;  %p2906_p3 = scmp.lt.s32.totalorder %s2195_s17, %s2195_s17 }
0x12b7   :  { %1851 = vadd.xlane.f32.xlu0 %v1850_v28  ;;  %p2902_p2 = scmp.ne.s32.totalorder %s2195_s17, %s2901_s8  ;;  %p2907_p4 = scmp.lt.s32.totalorder %s2901_s8, %s2901_s8 }
0x12b9   :  { %1981 = vmatpush1.bf16.msra.mxu1 %v2803_v24  ;;  %p2908_p5 = por %p2907_p4, %p2906_p3 }
0x12bb   :  { %p2909_p6 = pnand %p2908_p5, %p2902_p2 }
0x1344   :  { %v1852_v29 = vpop.xlane.xlu0 %1851 }
0x1345   :  { %v1853_v61 = vmul.f32 0.03125, %v1852_v29 }
0x1347   :  { %v1854_v19 = vsub.f32 %v3549_v8, %v1853_v61 }
0x1349   :  { %v1855_v59 = vmul.f32 %v1854_v19, %v1854_v19 }
0x134b   :  { %v1856_v60 = vsel %vm232_vm3, %v1855_v59, 0.0 }
0x134c   :  { %1857 = vadd.xlane.f32.xlu1 %v1856_v60 }
0x13d9   :  { %v1858_v43 = vpop.xlane.xlu1 %1857 }
0x13da   :  { %v1859_v40 = vmul.f32 0.03125, %v1858_v43 }
0x13dc   :  { %v1860_v33 = vadd.f32 1e-05, %v1859_v40 }
0x13de   :  { %2849 = vrsqrt.f32 %v1860_v33 }
0x13e8   :  { %v2850_v34 = vpop.eup %2849 }
0x13e9   :  { %v1862_v41 = vmul.f32 %v2850_v34, %v1854_v19 }
0x13eb   :  { %v1869_v3 = vmul.f32 %v2312_v39, %v1862_v41 }
0x13ed   :  { %v1876_v4 = vadd.f32 %v2313_v44, %v1869_v3 }
0x13ef   :  { %v1879_v5 = vpack.c.bf16 %v1876_v4, %v1876_v4  ;;  %v1877_v36 = vrot.slane %v1876_v4, 7 }
0x13f1   :  { %2331 = vmatmul.mubr.msk.bf16.vlgmr.msra.gmra.mrb[32].mxu1 %vm232_vm3, %v1879_v5  ;;  %v1878_v45 = vmul.f32 %v1877_v36, %v3173_v63  ;;  %v2811_v63 = vld [vmem:[%s3675_s21 + $0x50] sm:$0xff]  }
0x13f3   :  { %v1885_v17 = vpack.c.bf16 %v1878_v45, %v1878_v45 }
0x13f5   :  { %2326 = vmatmul.mubr.msk.bf16.vlgmr.msra.gmra.mrb[16].mxu0 %vm232_vm3, %v1885_v17 }
0x13f6   :  { %2625 = vmatpush3.bf16.msra.mxu0 %v2809_v47  ;;  %2640 = vmatprep.mubr.msk.bf16.mxu0 %vm2935_vm0, %v2936_v10 }
0x13f7   :  { %2626 = vmatprep.subr.bf16.mxu0 %v2936_v10 }
0x13fa   :  { %2627 = vmatpush3.bf16.msra.mxu0 %v2810_v48 }
0x13fb   :  { %2628 = vmatprep.subr.bf16.mxu0 %v2936_v10 }
0x13fe   :  { %2629 = vmatpush3.bf16.msra.mxu0 %v2811_v63 }
0x13ff   :  { %2630 = vmatprep.subr.bf16.mxu0 %v2936_v10 }
0x1402   :  { %2631 = vmatpush3.bf16.msra.mxu0 %v2812_v1 }
0x1403   :  { %2632 = vmatprep.subr.bf16.mxu0 %v2936_v10 }
0x1406   :  { %2633 = vmatpush3.bf16.msra.mxu0 %v2813_v50 }
0x1407   :  { %2634 = vmatprep.subr.bf16.mxu0 %v2936_v10 }
0x140a   :  { %2635 = vmatpush3.bf16.msra.mxu0 %v2814_v51 }
0x140b   :  { %2636 = vmatprep.subr.bf16.mxu0 %v2936_v10 }
0x140e   :  { %2637 = vmatpush3.bf16.msra.mxu0 %v2815_v16 }
0x140f   :  { %2638 = vmatprep.subr.bf16.mxu0 %v2936_v10  ;;  %v2029_v10 = vrot.slane %v2332_v53, %v1085_v35 }
0x1412   :  { %2639 = vmatpush3.bf16.msra.mxu0 %v2816_v52 }
0x14c4   :  { %v2012_v49 = vpop.f32.mrb[32].mxu1 }
0x14c5   :  { %v2014_v54 = vpop.f32.mrb[33].mxu1 }
0x14c6   :  { %v2016_v37 = vpop.f32.mrb[34].mxu1 }
0x14c7   :  { %v2017_v38 = vpop.f32.mrb[35].mxu1 }
0x14c8   :  { %v1948_v56 = vpop.f32.mrb[16].mxu0 }
0x14c9   :  { %v2013_v57 = vadd.f32 %v2012_v49, %v1948_v56  ;;  %v1950_v58 = vpop.f32.mrb[17].mxu0 }
0x14ca   :  { %v2015_v62 = vadd.f32 %v2014_v54, %v1950_v58  ;;  %v1952_v23 = vpop.f32.mrb[18].mxu0 }
0x14cb   :  { %v2032_v22 = vadd.f32 %v2025_v55, %v2013_v57  ;;  %v1953_v2 = vpop.f32.mrb[19].mxu0 }
0x14cc   :  { %v2033_v6 = vadd.f32 %v2029_v10, %v2015_v62 }
0x14cd   :  { %v2034_v7 = vmax.f32 %v2032_v22, 0.0 }
0x14ce   :  { %v2359_v31 = vmul.f32 -1.442695, %v2033_v6 }
0x14cf   :  { %v2035_v9 = vmul.f32 %v2034_v7, %v2034_v7 }
0x14d0   :  { %2851 = vpow2.f32 %v2359_v31 }
0x14d1   :  { %v2036_v11 = vpack.c.bf16 %v2035_v9, %v2035_v9 }
0x14d3   :  { %2641 = vmatmul.mubr.bf16.vlgmr.msra.gmra.mrb[20].mxu0 %v2036_v11 }
0x14da   :  { %v2852_v12 = vpop.eup %2851 }
0x14db   :  { %v2153_v30 = vadd.f32 1.0, %v2852_v12 }
0x14dd   :  { %2853 = vrcp.f32 %v2153_v30 }
0x14e7   :  { %v2854_v14 = vpop.eup %2853 }
0x15a6   :  { %v2144_v32 = vpop.f32.mrb[20].mxu0 }
0x15a7   :  { %v2145_v35 = vadd.f32 %v2350_v46, %v2144_v32  ;;  %v2642_v13 = vpop.f32.mrb[21].mxu0 }
0x15a8   :  { %v2147_v15 = vpop.f32.mrb[22].mxu0 }
0x15a9   :  { %v2156_v18 = vmul.f32 %v2854_v14, %v2145_v35  ;;  %v2643_v28 = vpop.f32.mrb[23].mxu0 }
0x15ab   :  { %v2157_v29 = vadd.f32 %v2156_v18, %v3549_v8 }
0x15ad   :  { %v2160_v61 = vsel %vm232_vm3, %v2157_v29, 0.0 }
0x15ae   :  { %2161 = vadd.xlane.f32.xlu0 %v2160_v61 }
0x163b   :  { %v2162_v19 = vpop.xlane.xlu0 %2161 }
0x163c   :  { %v2163_v59 = vmul.f32 0.03125, %v2162_v19 }
0x163e   :  { %v2164_v60 = vsub.f32 %v2157_v29, %v2163_v59 }
0x1640   :  { %v2165_v0 = vmul.f32 %v2164_v60, %v2164_v60 }
0x1642   :  { %v2166_v26 = vsel %vm232_vm3, %v2165_v0, 0.0 }
0x1643   :  { %2167 = vadd.xlane.f32.xlu0 %v2166_v26 }
0x16d0   :  { %v2168_v20 = vpop.xlane.xlu0 %2167 }
0x16d1   :  { %v2169_v21 = vmul.f32 0.03125, %v2168_v20 }
0x16d3   :  { %v2170_v24 = vadd.f32 1e-05, %v2169_v21 }
0x16d5   :  { %2855 = vrsqrt.f32 %v2170_v24 }
0x16df   :  { %v2856_v25 = vpop.eup %2855 }
0x16e0   :  { %v2172_v8 = vmul.f32 %v2856_v25, %v2164_v60 }
0x16e2   :  { %v2179_v43 = vmul.f32 %v2360_v27, %v2172_v8 }
0x16e4   :  { %v2186_v40 = vadd.f32 %v2361_v42, %v2179_v43 }
0x16e6   :  { %2187 = vst.msk [vmem:[#allocation7] sm:$0xff] %vm232_vm3, %v2186_v40 }
0x16e7   :  { %2912 = shalt.err (!%p2909_p6)
}
0x16e8   :  { %s2913_s3 = scalar_lea.hbm %s3677_s23, 128 }
0x16e9   :  { %p2914_p7 = scmp.ne.s32.totalorder %s3677_s23, %s2913_s3  ;;  %p2917_p8 = scmp.lt.u32.totalorder %s2913_s3, %s3677_s23 }
0x16eb   :  { %p2919_p9 = pnand %p2917_p8, %p2914_p7 }
0x16ed   :  { %2922 = shalt.err (!%p2919_p9)
}
0x16ee   :  { %2197 = dma.vmem_to_hbm [thread:$0]  %s2195_s17, 128, %s3677_s23, [#allocation4]  }
0x16ef   :  { %2927 = dma.done.wait [#allocation4], 128  }
0x16f0   :  { %2928 = vsyncadd [#allocation4], 4294967168 }
0x16f1   :  { %2201 = vsyncpa [#allocation3], 1 }
0x16f2   :  { %2202 = vsyncpa [#allocation6], 1 }
0x16f3   :  { %2203 = vsyncpa [#allocation4], 1 }

</bundles_post_ra>
